<compile_context>
chip_gen: v7x
topology: tpu7x:2x2x1
jax: 0.10.0
libtpu: 0.0.40
codegen_flags: <defaults>
</compile_context>

<pallas_src>
import functools
import math

import jax
import jax.numpy as jnp
from jax.experimental import pallas as pl
from jax.experimental.pallas import tpu as pltpu

MXU_DTYPE = jnp.bfloat16              # MXU operand dtype; accumulation stays f32
VMEM_LIMIT_BYTES = 32 * 1024 * 1024   # safe on v5e/v6e (128 MiB) and v7x (64 MiB/TC)
LN_EPS = 1e-5


# ------------------------------ small helpers -------------------------------

def _row_tile(n, cap=256):
    """Largest row tile that divides n, is a multiple of 8, and is <= cap.

    Falls back to the full extent (a full-array block is always legal).
    """
    if n <= cap:
        return n
    t = (cap // 8) * 8
    while t >= 8:
        if n % t == 0:
            return t
        t -= 8
    return n


def _cost(flops, transcendentals, n_bytes):
    return pl.CostEstimate(flops=int(flops), transcendentals=int(transcendentals),
                           bytes_accessed=int(n_bytes))


def _layernorm(x, gamma, beta):
    """LayerNorm over the last axis, f32 math, eps matching nn.LayerNorm."""
    mean = jnp.mean(x, axis=-1, keepdims=True)
    cen = x - mean
    var = jnp.mean(cen * cen, axis=-1, keepdims=True)
    return cen * jax.lax.rsqrt(var + LN_EPS) * gamma + beta


def _mxu_dot(a, b):
    """bf16-operand, f32-accumulation matmul (MXU)."""
    return jnp.dot(a.astype(MXU_DTYPE), b.astype(MXU_DTYPE),
                   preferred_element_type=jnp.float32)


# ------------------------------- linear kernel ------------------------------

def _linear_kernel(x_ref, w_ref, b_ref, o_ref, *, activation=None):
    y = _mxu_dot(x_ref[...], w_ref[...]) + b_ref[...]
    if activation == "relu":
        y = jnp.maximum(y, 0.0)
    o_ref[...] = y.astype(o_ref.dtype)


def linear(x, w, b, activation=None):
    """y = x @ w + b.  x:(N,Din), w:(Din,Dout), b:(Dout,).  Row-tiled over N."""
    N, Din = x.shape
    Dout = w.shape[1]
    tm = _row_tile(N)
    kern = functools.partial(_linear_kernel, activation=activation)
    return pl.pallas_call(
        kern,
        out_shape=jax.ShapeDtypeStruct((N, Dout), x.dtype),
        grid_spec=pltpu.PrefetchScalarGridSpec(
            num_scalar_prefetch=0,
            grid=(N // tm,),
            in_specs=[
                pl.BlockSpec((tm, Din), lambda i: (i, 0)),
                pl.BlockSpec((Din, Dout), lambda i: (0, 0)),
                pl.BlockSpec((1, Dout), lambda i: (0, 0)),
            ],
            out_specs=pl.BlockSpec((tm, Dout), lambda i: (i, 0)),
        ),
        compiler_params=pltpu.CompilerParams(
            dimension_semantics=("parallel",),
            vmem_limit_bytes=VMEM_LIMIT_BYTES,
        ),
        cost_estimate=_cost(2 * N * Din * Dout, 0,
                            4 * (N * Din + Din * Dout + Dout + N * Dout)),
    )(x, w, b.reshape(1, Dout))


# --------------- fully fused TransformerEncoderLayer kernel ------------------

def _encoder_layer_kernel(x_ref, wqkv_ref, bqkv_ref, wo_ref, bo_ref,
                          g1_ref, beta1_ref,
                          w1_ref, b1_ref, w2_ref, b2_ref,
                          g2_ref, beta2_ref, o_ref, *, n_heads):
    x = x_ref[...]                                   # (T, D) f32
    T, D = x.shape
    hd = D // n_heads
    scale = 1.0 / math.sqrt(hd)                      # q-scale folded in-kernel

    # ---- multi-head self-attention -----------------------------------------
    # Packed QKV projection (bf16 operands, f32 accumulation).
    qkv = _mxu_dot(x, wqkv_ref[...]) + bqkv_ref[...]
    q = qkv[:, 0:D] * scale
    k = qkv[:, D:2 * D]
    v = qkv[:, 2 * D:3 * D]
    wo = wo_ref[...]                                 # (D, D), loaded once

    # out_proj(concat_h o_h) == sum_h o_h @ wo[h*hd:(h+1)*hd, :], so the
    # accumulator keeps the full (T, D) lane-dense layout throughout.
    attn = jnp.zeros((T, D), jnp.float32)
    for h in range(n_heads):                         # static unroll over heads
        sl = slice(h * hd, (h + 1) * hd)
        s = jax.lax.dot_general(q[:, sl].astype(MXU_DTYPE),
                                k[:, sl].astype(MXU_DTYPE),
                                (((1,), (1,)), ((), ())),
                                preferred_element_type=jnp.float32)   # (T, T)
        s = s - jnp.max(s, axis=-1, keepdims=True)
        p = jnp.exp(s)
        p = p * pl.reciprocal(jnp.sum(p, axis=-1, keepdims=True), approx=True)
        oh = _mxu_dot(p, v[:, sl])                                    # (T, hd)
        attn = attn + _mxu_dot(oh, wo[sl, :])                         # (T, D)
    attn = attn + bo_ref[...]

    # residual1 (dropout = identity) + norm1
    src = _layernorm(x + attn, g1_ref[...], beta1_ref[...])

    # ---- feed-forward -------------------------------------------------------
    hmid = _mxu_dot(src, w1_ref[...]) + b1_ref[...]
    hmid = jnp.maximum(hmid, 0.0)                    # ReLU (f32 on the VPU)
    y = _mxu_dot(hmid, w2_ref[...]) + b2_ref[...]

    # residual2 (dropout = identity) + norm2
    o_ref[...] = _layernorm(src + y, g2_ref[...], beta2_ref[...]).astype(o_ref.dtype)


def encoder_layer(x_btd, lp, n_heads):
    """One fused TransformerEncoderLayer (post-norm), gridded over batch."""
    B, T, D = x_btd.shape
    F = lp["w_ff1"].shape[1]
    kern = functools.partial(_encoder_layer_kernel, n_heads=n_heads)
    flops = B * (2 * T * D * 3 * D + 4 * T * T * D + 2 * T * D * D + 4 * T * D * F)
    trans = B * (n_heads * T * T + n_heads * T + 2 * T)
    nbytes = 4 * (2 * B * T * D + 3 * D * D + D * D + 2 * D * F
                  + 3 * D + D + F + D + 4 * D)
    return pl.pallas_call(
        kern,
        out_shape=jax.ShapeDtypeStruct((B, T, D), x_btd.dtype),
        grid_spec=pltpu.PrefetchScalarGridSpec(
            num_scalar_prefetch=0,
            grid=(B,),
            in_specs=[
                pl.BlockSpec((None, T, D), lambda b: (b, 0, 0)),   # x (per batch)
                pl.BlockSpec((D, 3 * D), lambda b: (0, 0)),        # w_qkv
                pl.BlockSpec((1, 3 * D), lambda b: (0, 0)),        # b_qkv
                pl.BlockSpec((D, D), lambda b: (0, 0)),            # w_out
                pl.BlockSpec((1, D), lambda b: (0, 0)),            # b_out
                pl.BlockSpec((1, D), lambda b: (0, 0)),            # ln1 gamma
                pl.BlockSpec((1, D), lambda b: (0, 0)),            # ln1 beta
                pl.BlockSpec((D, F), lambda b: (0, 0)),            # w_ff1
                pl.BlockSpec((1, F), lambda b: (0, 0)),            # b_ff1
                pl.BlockSpec((F, D), lambda b: (0, 0)),            # w_ff2
                pl.BlockSpec((1, D), lambda b: (0, 0)),            # b_ff2
                pl.BlockSpec((1, D), lambda b: (0, 0)),            # ln2 gamma
                pl.BlockSpec((1, D), lambda b: (0, 0)),            # ln2 beta
            ],
            out_specs=pl.BlockSpec((None, T, D), lambda b: (b, 0, 0)),
        ),
        compiler_params=pltpu.CompilerParams(
            dimension_semantics=("parallel",),
            vmem_limit_bytes=VMEM_LIMIT_BYTES,
        ),
        cost_estimate=_cost(flops, trans, nbytes),
    )(x_btd,
      lp["w_qkv"], lp["b_qkv"].reshape(1, 3 * D),
      lp["w_out"], lp["b_out"].reshape(1, D),
      lp["ln1_g"].reshape(1, D), lp["ln1_b"].reshape(1, D),
      lp["w_ff1"], lp["b_ff1"].reshape(1, F),
      lp["w_ff2"], lp["b_ff2"].reshape(1, D),
      lp["ln2_g"].reshape(1, D), lp["ln2_b"].reshape(1, D))


# ------------------------- model glue (plain JAX) ----------------------------

def attention_model_forward(x_bct, params, n_heads):
    """Equivalent of AttentionModel.forward; x: (B, in_channels, T)."""
    B, C, T = x_bct.shape
    D = params["in_w"].shape[1]
    # x.permute(0, 2, 1) -> (B, T, C); Linear(in_channels, d_model)
    h = jnp.transpose(x_bct, (0, 2, 1)).reshape(B * T, C)
    h = linear(h, params["in_w"], params["in_b"]).reshape(B, T, D)
    # torch's (T, B, D) layout is computationally equivalent to our (B, T, D):
    # self-attention mixes only within each batch element.
    for lp in params["layers"]:
        h = encoder_layer(h, lp, n_heads)
    # Final Linear(d_model, d_model)
    h = linear(h.reshape(B * T, D), params["out_w"], params["out_b"]).reshape(B, T, D)
    # x.permute(1, 0, 2); x[:, 0:, :] is an identity slice -> (B, T, D)
    return h


# -------------------- pure-JAX reference (same numerics) ---------------------

def _ref_forward(x_bct, params, n_heads):
    """Mirror of the kernel math in plain jnp (bf16 MXU operands, f32 acc)."""
    B, C, T = x_bct.shape
    D = params["in_w"].shape[1]

    def mm(a, b):
        return jnp.dot(a.astype(MXU_DTYPE), b.astype(MXU_DTYPE),
                       preferred_element_type=jnp.float32)

    h = jnp.transpose(x_bct, (0, 2, 1)).reshape(B * T, C)
    h = (mm(h, params["in_w"]) + params["in_b"]).reshape(B, T, D)
    for lp in params["layers"]:
        hd = D // n_heads
        scale = 1.0 / math.sqrt(hd)
        qkv = mm(h.reshape(B * T, D), lp["w_qkv"]).reshape(B, T, 3 * D) + lp["b_qkv"]
        q, k, v = qkv[..., :D] * scale, qkv[..., D:2 * D], qkv[..., 2 * D:]
        attn = jnp.zeros((B, T, D), jnp.float32)
        for hh in range(n_heads):
            sl = slice(hh * hd, (hh + 1) * hd)
            s = jnp.einsum('btd,bsd->bts', q[..., sl].astype(MXU_DTYPE),
                           k[..., sl].astype(MXU_DTYPE),
                           preferred_element_type=jnp.float32)
            s = s - jnp.max(s, axis=-1, keepdims=True)
            p = jnp.exp(s)
            p = p / jnp.sum(p, axis=-1, keepdims=True)
            oh = jnp.einsum('bts,bsd->btd', p.astype(MXU_DTYPE),
                            v[..., sl].astype(MXU_DTYPE),
                            preferred_element_type=jnp.float32)
            attn = attn + mm(oh.reshape(B * T, hd),
                             lp["w_out"][sl, :]).reshape(B, T, D)
        attn = attn + lp["b_out"]
        src = _layernorm(h + attn, lp["ln1_g"], lp["ln1_b"])
        mid = jnp.maximum(mm(src.reshape(B * T, D), lp["w_ff1"]) + lp["b_ff1"], 0.0)
        y = (mm(mid, lp["w_ff2"]) + lp["b_ff2"]).reshape(B, T, D)
        h = _layernorm(src + y, lp["ln2_g"], lp["ln2_b"])
    h = (mm(h.reshape(B * T, D), params["out_w"]) + params["out_b"]).reshape(B, T, D)
    return h


# --------------------------- deterministic init ------------------------------
# NOTE: PyTorch stores in_proj_weight as (3D, D) and out_proj.weight as (D, D)
# applied as x @ W^T; when loading real checkpoints, w_qkv / w_out / w_ff*
# below must be the transposes of the torch tensors.

def _dense(key, din, dout):
    kw, kb = jax.random.split(key)
    lim = 1.0 / math.sqrt(din)
    w = jax.random.uniform(kw, (din, dout), jnp.float32, -lim, lim)
    b = jax.random.uniform(kb, (dout,), jnp.float32, -lim, lim)
    return w, b


def init_params(key, in_channels, d_model, n_layers):
    ff = 4 * d_model
    keys = jax.random.split(key, n_layers + 2)
    in_w, in_b = _dense(keys[0], in_channels, d_model)
    out_w, out_b = _dense(keys[1], d_model, d_model)
    layers = []
    for li in range(n_layers):
        k = jax.random.split(keys[2 + li], 4)
        w_qkv, b_qkv = _dense(k[0], d_model, 3 * d_model)
        w_out, b_out = _dense(k[1], d_model, d_model)
        w_ff1, b_ff1 = _dense(k[2], d_model, ff)
        w_ff2, b_ff2 = _dense(k[3], ff, d_model)
        layers.append(dict(
            w_qkv=w_qkv, b_qkv=b_qkv, w_out=w_out, b_out=b_out,
            w_ff1=w_ff1, b_ff1=b_ff1, w_ff2=w_ff2, b_ff2=b_ff2,
            ln1_g=jnp.ones((d_model,), jnp.float32),
            ln1_b=jnp.zeros((d_model,), jnp.float32),
            ln2_g=jnp.ones((d_model,), jnp.float32),
            ln2_b=jnp.zeros((d_model,), jnp.float32),
        ))
    return dict(in_w=in_w, in_b=in_b, out_w=out_w, out_b=out_b, layers=layers)


# ----------------------------------- main ------------------------------------

if __name__ == "__main__":
    B, C, T = 2, 4, 8          # batch, in_channels, sequence length
    d_model, n_heads, n_layers = 32, 4, 2

    key = jax.random.PRNGKey(0)
    k_x, k_p = jax.random.split(key)
    x = jax.random.normal(k_x, (B, C, T), dtype=jnp.float32)
    params = init_params(k_p, C, d_model, n_layers)

    fwd = jax.jit(functools.partial(attention_model_forward, n_heads=n_heads))
    out = jax.block_until_ready(fwd(x, params))

    assert out.shape == (B, T, d_model), out.shape
    assert bool(jnp.all(jnp.isfinite(out)))

    # Correctness check against a pure-JAX reference with matching numerics.
    ref = jax.block_until_ready(
        jax.jit(functools.partial(_ref_forward, n_heads=n_heads))(x, params))
    max_err = float(jnp.max(jnp.abs(out - ref)))
    assert max_err < 5e-2, f"max abs err vs reference: {max_err}"

    print("KERNEL_OK")
</pallas_src>

<mosaic_0001>
module attributes {stable_mosaic.version = 11 : i64} {
  func.func @_encoder_layer_kernel(%arg0: i32, %arg1: memref<1x8x32xf32, #tpu.memory_space<vmem>>, %arg2: memref<32x96xf32, #tpu.memory_space<vmem>>, %arg3: memref<1x96xf32, #tpu.memory_space<vmem>>, %arg4: memref<32x32xf32, #tpu.memory_space<vmem>>, %arg5: memref<1x32xf32, #tpu.memory_space<vmem>>, %arg6: memref<1x32xf32, #tpu.memory_space<vmem>>, %arg7: memref<1x32xf32, #tpu.memory_space<vmem>>, %arg8: memref<32x128xf32, #tpu.memory_space<vmem>>, %arg9: memref<1x128xf32, #tpu.memory_space<vmem>>, %arg10: memref<128x32xf32, #tpu.memory_space<vmem>>, %arg11: memref<1x32xf32, #tpu.memory_space<vmem>>, %arg12: memref<1x32xf32, #tpu.memory_space<vmem>>, %arg13: memref<1x32xf32, #tpu.memory_space<vmem>>, %arg14: memref<1x8x32xf32, #tpu.memory_space<vmem>>) attributes {dimension_semantics = [#tpu.dimension_semantics<parallel>], iteration_bounds = array<i64: 2>, scalar_prefetch = 0 : i64, scratch_operands = 0 : i64, tpu.core_type = #tpu.core_type<tc>, window_params = [{transform_indices = @transform_0, window_bounds = array<i64: 1, 8, 32>}, {pipeline_mode = #tpu.pipeline_mode<synchronous>, transform_indices = @transform_1, window_bounds = array<i64: 32, 96>}, {pipeline_mode = #tpu.pipeline_mode<synchronous>, transform_indices = @transform_2, window_bounds = array<i64: 1, 96>}, {pipeline_mode = #tpu.pipeline_mode<synchronous>, transform_indices = @transform_3, window_bounds = array<i64: 32, 32>}, {pipeline_mode = #tpu.pipeline_mode<synchronous>, transform_indices = @transform_4, window_bounds = array<i64: 1, 32>}, {pipeline_mode = #tpu.pipeline_mode<synchronous>, transform_indices = @transform_5, window_bounds = array<i64: 1, 32>}, {pipeline_mode = #tpu.pipeline_mode<synchronous>, transform_indices = @transform_6, window_bounds = array<i64: 1, 32>}, {pipeline_mode = #tpu.pipeline_mode<synchronous>, transform_indices = @transform_7, window_bounds = array<i64: 32, 128>}, {pipeline_mode = #tpu.pipeline_mode<synchronous>, transform_indices = @transform_8, window_bounds = array<i64: 1, 128>}, {pipeline_mode = #tpu.pipeline_mode<synchronous>, transform_indices = @transform_9, window_bounds = array<i64: 128, 32>}, {pipeline_mode = #tpu.pipeline_mode<synchronous>, transform_indices = @transform_10, window_bounds = array<i64: 1, 32>}, {pipeline_mode = #tpu.pipeline_mode<synchronous>, transform_indices = @transform_11, window_bounds = array<i64: 1, 32>}, {pipeline_mode = #tpu.pipeline_mode<synchronous>, transform_indices = @transform_12, window_bounds = array<i64: 1, 32>}, {transform_indices = @transform_13, window_bounds = array<i64: 1, 8, 32>}]} {
    %c0 = arith.constant 0 : index
    %c0_0 = arith.constant 0 : index
    %c0_1 = arith.constant 0 : index
    %0 = vector.load %arg1[%c0, %c0_0, %c0_1] : memref<1x8x32xf32, #tpu.memory_space<vmem>>, vector<1x8x32xf32>
    %1 = vector.shape_cast %0 : vector<1x8x32xf32> to vector<8x32xf32>
    %c0_2 = arith.constant 0 : index
    %c0_3 = arith.constant 0 : index
    %2 = vector.load %arg2[%c0_2, %c0_3] : memref<32x96xf32, #tpu.memory_space<vmem>>, vector<32x96xf32>
    %3 = arith.truncf %1 : vector<8x32xf32> to vector<8x32xbf16>
    %4 = arith.truncf %2 : vector<32x96xf32> to vector<32x96xbf16>
    %cst = arith.constant dense<0.000000e+00> : vector<8x96xf32>
    %5 = tpu.matmul %3, %4, %cst {dimension_numbers = #tpu.dot_dimension_numbers<[1], [0], [0], [1], [0, 0, 1, 1], [], []>} : vector<8x32xbf16>, vector<32x96xbf16>, vector<8x96xf32> -> vector<8x96xf32>
    %c0_4 = arith.constant 0 : index
    %c0_5 = arith.constant 0 : index
    %6 = vector.load %arg3[%c0_4, %c0_5] : memref<1x96xf32, #tpu.memory_space<vmem>>, vector<1x96xf32>
    %7 = vector.broadcast %6 : vector<1x96xf32> to vector<8x96xf32>
    %8 = arith.addf %5, %7 : vector<8x96xf32>
    %9 = vector.extract_strided_slice %8 {offsets = [0, 0], sizes = [8, 32], strides = [1, 1]} : vector<8x96xf32> to vector<8x32xf32>
    %cst_6 = arith.constant 0.353553385 : f32
    %10 = vector.broadcast %cst_6 : f32 to vector<8x32xf32>
    %11 = arith.mulf %9, %10 : vector<8x32xf32>
    %12 = vector.extract_strided_slice %8 {offsets = [0, 32], sizes = [8, 32], strides = [1, 1]} : vector<8x96xf32> to vector<8x32xf32>
    %13 = vector.extract_strided_slice %8 {offsets = [0, 64], sizes = [8, 32], strides = [1, 1]} : vector<8x96xf32> to vector<8x32xf32>
    %c0_7 = arith.constant 0 : index
    %c0_8 = arith.constant 0 : index
    %14 = vector.load %arg4[%c0_7, %c0_8] : memref<32x32xf32, #tpu.memory_space<vmem>>, vector<32x32xf32>
    %cst_9 = arith.constant 0.000000e+00 : f32
    %15 = vector.broadcast %cst_9 : f32 to vector<8x32xf32>
    %16 = vector.extract_strided_slice %11 {offsets = [0, 0], sizes = [8, 8], strides = [1, 1]} : vector<8x32xf32> to vector<8x8xf32>
    %17 = arith.truncf %16 : vector<8x8xf32> to vector<8x8xbf16>
    %18 = vector.extract_strided_slice %12 {offsets = [0, 0], sizes = [8, 8], strides = [1, 1]} : vector<8x32xf32> to vector<8x8xf32>
    %19 = arith.truncf %18 : vector<8x8xf32> to vector<8x8xbf16>
    %cst_10 = arith.constant dense<0.000000e+00> : vector<8x8xf32>
    %20 = tpu.matmul %17, %19, %cst_10 {dimension_numbers = #tpu.dot_dimension_numbers<[1], [1], [0], [0], [0, 0, 1, 0], [], []>} : vector<8x8xbf16>, vector<8x8xbf16>, vector<8x8xf32> -> vector<8x8xf32>
    %cst_11 = arith.constant dense<0xFF800000> : vector<8xf32>
    %21 = vector.multi_reduction <maximumf>, %20, %cst_11 [1] : vector<8x8xf32> to vector<8xf32>
    %22 = vector.shape_cast %21 : vector<8xf32> to vector<8x1xf32>
    %23 = vector.broadcast %22 : vector<8x1xf32> to vector<8x8xf32>
    %24 = arith.subf %20, %23 : vector<8x8xf32>
    %25 = math.exp %24 : vector<8x8xf32>
    %cst_12 = arith.constant dense<0.000000e+00> : vector<8xf32>
    %26 = vector.multi_reduction <add>, %25, %cst_12 [1] : vector<8x8xf32> to vector<8xf32>
    %27 = vector.shape_cast %26 : vector<8xf32> to vector<8x1xf32>
    %28 = tpu.reciprocal %27 {approx = true} : vector<8x1xf32> -> vector<8x1xf32>
    %29 = vector.broadcast %28 : vector<8x1xf32> to vector<8x8xf32>
    %30 = arith.mulf %25, %29 : vector<8x8xf32>
    %31 = vector.extract_strided_slice %13 {offsets = [0, 0], sizes = [8, 8], strides = [1, 1]} : vector<8x32xf32> to vector<8x8xf32>
    %32 = arith.truncf %30 : vector<8x8xf32> to vector<8x8xbf16>
    %33 = arith.truncf %31 : vector<8x8xf32> to vector<8x8xbf16>
    %cst_13 = arith.constant dense<0.000000e+00> : vector<8x8xf32>
    %34 = tpu.matmul %32, %33, %cst_13 {dimension_numbers = #tpu.dot_dimension_numbers<[1], [0], [0], [1], [0, 0, 1, 1], [], []>} : vector<8x8xbf16>, vector<8x8xbf16>, vector<8x8xf32> -> vector<8x8xf32>
    %35 = vector.extract_strided_slice %14 {offsets = [0, 0], sizes = [8, 32], strides = [1, 1]} : vector<32x32xf32> to vector<8x32xf32>
    %36 = arith.truncf %34 : vector<8x8xf32> to vector<8x8xbf16>
    %37 = arith.truncf %35 : vector<8x32xf32> to vector<8x32xbf16>
    %cst_14 = arith.constant dense<0.000000e+00> : vector<8x32xf32>
    %38 = tpu.matmul %36, %37, %cst_14 {dimension_numbers = #tpu.dot_dimension_numbers<[1], [0], [0], [1], [0, 0, 1, 1], [], []>} : vector<8x8xbf16>, vector<8x32xbf16>, vector<8x32xf32> -> vector<8x32xf32>
    %39 = arith.addf %15, %38 : vector<8x32xf32>
    %40 = vector.extract_strided_slice %11 {offsets = [0, 8], sizes = [8, 8], strides = [1, 1]} : vector<8x32xf32> to vector<8x8xf32>
    %41 = arith.truncf %40 : vector<8x8xf32> to vector<8x8xbf16>
    %42 = vector.extract_strided_slice %12 {offsets = [0, 8], sizes = [8, 8], strides = [1, 1]} : vector<8x32xf32> to vector<8x8xf32>
    %43 = arith.truncf %42 : vector<8x8xf32> to vector<8x8xbf16>
    %cst_15 = arith.constant dense<0.000000e+00> : vector<8x8xf32>
    %44 = tpu.matmul %41, %43, %cst_15 {dimension_numbers = #tpu.dot_dimension_numbers<[1], [1], [0], [0], [0, 0, 1, 0], [], []>} : vector<8x8xbf16>, vector<8x8xbf16>, vector<8x8xf32> -> vector<8x8xf32>
    %cst_16 = arith.constant dense<0xFF800000> : vector<8xf32>
    %45 = vector.multi_reduction <maximumf>, %44, %cst_16 [1] : vector<8x8xf32> to vector<8xf32>
    %46 = vector.shape_cast %45 : vector<8xf32> to vector<8x1xf32>
    %47 = vector.broadcast %46 : vector<8x1xf32> to vector<8x8xf32>
    %48 = arith.subf %44, %47 : vector<8x8xf32>
    %49 = math.exp %48 : vector<8x8xf32>
    %cst_17 = arith.constant dense<0.000000e+00> : vector<8xf32>
    %50 = vector.multi_reduction <add>, %49, %cst_17 [1] : vector<8x8xf32> to vector<8xf32>
    %51 = vector.shape_cast %50 : vector<8xf32> to vector<8x1xf32>
    %52 = tpu.reciprocal %51 {approx = true} : vector<8x1xf32> -> vector<8x1xf32>
    %53 = vector.broadcast %52 : vector<8x1xf32> to vector<8x8xf32>
    %54 = arith.mulf %49, %53 : vector<8x8xf32>
    %55 = vector.extract_strided_slice %13 {offsets = [0, 8], sizes = [8, 8], strides = [1, 1]} : vector<8x32xf32> to vector<8x8xf32>
    %56 = arith.truncf %54 : vector<8x8xf32> to vector<8x8xbf16>
    %57 = arith.truncf %55 : vector<8x8xf32> to vector<8x8xbf16>
    %cst_18 = arith.constant dense<0.000000e+00> : vector<8x8xf32>
    %58 = tpu.matmul %56, %57, %cst_18 {dimension_numbers = #tpu.dot_dimension_numbers<[1], [0], [0], [1], [0, 0, 1, 1], [], []>} : vector<8x8xbf16>, vector<8x8xbf16>, vector<8x8xf32> -> vector<8x8xf32>
    %59 = vector.extract_strided_slice %14 {offsets = [8, 0], sizes = [8, 32], strides = [1, 1]} : vector<32x32xf32> to vector<8x32xf32>
    %60 = arith.truncf %58 : vector<8x8xf32> to vector<8x8xbf16>
    %61 = arith.truncf %59 : vector<8x32xf32> to vector<8x32xbf16>
    %cst_19 = arith.constant dense<0.000000e+00> : vector<8x32xf32>
    %62 = tpu.matmul %60, %61, %cst_19 {dimension_numbers = #tpu.dot_dimension_numbers<[1], [0], [0], [1], [0, 0, 1, 1], [], []>} : vector<8x8xbf16>, vector<8x32xbf16>, vector<8x32xf32> -> vector<8x32xf32>
    %63 = arith.addf %39, %62 : vector<8x32xf32>
    %64 = vector.extract_strided_slice %11 {offsets = [0, 16], sizes = [8, 8], strides = [1, 1]} : vector<8x32xf32> to vector<8x8xf32>
    %65 = arith.truncf %64 : vector<8x8xf32> to vector<8x8xbf16>
    %66 = vector.extract_strided_slice %12 {offsets = [0, 16], sizes = [8, 8], strides = [1, 1]} : vector<8x32xf32> to vector<8x8xf32>
    %67 = arith.truncf %66 : vector<8x8xf32> to vector<8x8xbf16>
    %cst_20 = arith.constant dense<0.000000e+00> : vector<8x8xf32>
    %68 = tpu.matmul %65, %67, %cst_20 {dimension_numbers = #tpu.dot_dimension_numbers<[1], [1], [0], [0], [0, 0, 1, 0], [], []>} : vector<8x8xbf16>, vector<8x8xbf16>, vector<8x8xf32> -> vector<8x8xf32>
    %cst_21 = arith.constant dense<0xFF800000> : vector<8xf32>
    %69 = vector.multi_reduction <maximumf>, %68, %cst_21 [1] : vector<8x8xf32> to vector<8xf32>
    %70 = vector.shape_cast %69 : vector<8xf32> to vector<8x1xf32>
    %71 = vector.broadcast %70 : vector<8x1xf32> to vector<8x8xf32>
    %72 = arith.subf %68, %71 : vector<8x8xf32>
    %73 = math.exp %72 : vector<8x8xf32>
    %cst_22 = arith.constant dense<0.000000e+00> : vector<8xf32>
    %74 = vector.multi_reduction <add>, %73, %cst_22 [1] : vector<8x8xf32> to vector<8xf32>
    %75 = vector.shape_cast %74 : vector<8xf32> to vector<8x1xf32>
    %76 = tpu.reciprocal %75 {approx = true} : vector<8x1xf32> -> vector<8x1xf32>
    %77 = vector.broadcast %76 : vector<8x1xf32> to vector<8x8xf32>
    %78 = arith.mulf %73, %77 : vector<8x8xf32>
    %79 = vector.extract_strided_slice %13 {offsets = [0, 16], sizes = [8, 8], strides = [1, 1]} : vector<8x32xf32> to vector<8x8xf32>
    %80 = arith.truncf %78 : vector<8x8xf32> to vector<8x8xbf16>
    %81 = arith.truncf %79 : vector<8x8xf32> to vector<8x8xbf16>
    %cst_23 = arith.constant dense<0.000000e+00> : vector<8x8xf32>
    %82 = tpu.matmul %80, %81, %cst_23 {dimension_numbers = #tpu.dot_dimension_numbers<[1], [0], [0], [1], [0, 0, 1, 1], [], []>} : vector<8x8xbf16>, vector<8x8xbf16>, vector<8x8xf32> -> vector<8x8xf32>
    %83 = vector.extract_strided_slice %14 {offsets = [16, 0], sizes = [8, 32], strides = [1, 1]} : vector<32x32xf32> to vector<8x32xf32>
    %84 = arith.truncf %82 : vector<8x8xf32> to vector<8x8xbf16>
    %85 = arith.truncf %83 : vector<8x32xf32> to vector<8x32xbf16>
    %cst_24 = arith.constant dense<0.000000e+00> : vector<8x32xf32>
    %86 = tpu.matmul %84, %85, %cst_24 {dimension_numbers = #tpu.dot_dimension_numbers<[1], [0], [0], [1], [0, 0, 1, 1], [], []>} : vector<8x8xbf16>, vector<8x32xbf16>, vector<8x32xf32> -> vector<8x32xf32>
    %87 = arith.addf %63, %86 : vector<8x32xf32>
    %88 = vector.extract_strided_slice %11 {offsets = [0, 24], sizes = [8, 8], strides = [1, 1]} : vector<8x32xf32> to vector<8x8xf32>
    %89 = arith.truncf %88 : vector<8x8xf32> to vector<8x8xbf16>
    %90 = vector.extract_strided_slice %12 {offsets = [0, 24], sizes = [8, 8], strides = [1, 1]} : vector<8x32xf32> to vector<8x8xf32>
    %91 = arith.truncf %90 : vector<8x8xf32> to vector<8x8xbf16>
    %cst_25 = arith.constant dense<0.000000e+00> : vector<8x8xf32>
    %92 = tpu.matmul %89, %91, %cst_25 {dimension_numbers = #tpu.dot_dimension_numbers<[1], [1], [0], [0], [0, 0, 1, 0], [], []>} : vector<8x8xbf16>, vector<8x8xbf16>, vector<8x8xf32> -> vector<8x8xf32>
    %cst_26 = arith.constant dense<0xFF800000> : vector<8xf32>
    %93 = vector.multi_reduction <maximumf>, %92, %cst_26 [1] : vector<8x8xf32> to vector<8xf32>
    %94 = vector.shape_cast %93 : vector<8xf32> to vector<8x1xf32>
    %95 = vector.broadcast %94 : vector<8x1xf32> to vector<8x8xf32>
    %96 = arith.subf %92, %95 : vector<8x8xf32>
    %97 = math.exp %96 : vector<8x8xf32>
    %cst_27 = arith.constant dense<0.000000e+00> : vector<8xf32>
    %98 = vector.multi_reduction <add>, %97, %cst_27 [1] : vector<8x8xf32> to vector<8xf32>
    %99 = vector.shape_cast %98 : vector<8xf32> to vector<8x1xf32>
    %100 = tpu.reciprocal %99 {approx = true} : vector<8x1xf32> -> vector<8x1xf32>
    %101 = vector.broadcast %100 : vector<8x1xf32> to vector<8x8xf32>
    %102 = arith.mulf %97, %101 : vector<8x8xf32>
    %103 = vector.extract_strided_slice %13 {offsets = [0, 24], sizes = [8, 8], strides = [1, 1]} : vector<8x32xf32> to vector<8x8xf32>
    %104 = arith.truncf %102 : vector<8x8xf32> to vector<8x8xbf16>
    %105 = arith.truncf %103 : vector<8x8xf32> to vector<8x8xbf16>
    %cst_28 = arith.constant dense<0.000000e+00> : vector<8x8xf32>
    %106 = tpu.matmul %104, %105, %cst_28 {dimension_numbers = #tpu.dot_dimension_numbers<[1], [0], [0], [1], [0, 0, 1, 1], [], []>} : vector<8x8xbf16>, vector<8x8xbf16>, vector<8x8xf32> -> vector<8x8xf32>
    %107 = vector.extract_strided_slice %14 {offsets = [24, 0], sizes = [8, 32], strides = [1, 1]} : vector<32x32xf32> to vector<8x32xf32>
    %108 = arith.truncf %106 : vector<8x8xf32> to vector<8x8xbf16>
    %109 = arith.truncf %107 : vector<8x32xf32> to vector<8x32xbf16>
    %cst_29 = arith.constant dense<0.000000e+00> : vector<8x32xf32>
    %110 = tpu.matmul %108, %109, %cst_29 {dimension_numbers = #tpu.dot_dimension_numbers<[1], [0], [0], [1], [0, 0, 1, 1], [], []>} : vector<8x8xbf16>, vector<8x32xbf16>, vector<8x32xf32> -> vector<8x32xf32>
    %111 = arith.addf %87, %110 : vector<8x32xf32>
    %c0_30 = arith.constant 0 : index
    %c0_31 = arith.constant 0 : index
    %112 = vector.load %arg5[%c0_30, %c0_31] : memref<1x32xf32, #tpu.memory_space<vmem>>, vector<1x32xf32>
    %113 = vector.broadcast %112 : vector<1x32xf32> to vector<8x32xf32>
    %114 = arith.addf %111, %113 : vector<8x32xf32>
    %115 = arith.addf %1, %114 : vector<8x32xf32>
    %c0_32 = arith.constant 0 : index
    %c0_33 = arith.constant 0 : index
    %116 = vector.load %arg6[%c0_32, %c0_33] : memref<1x32xf32, #tpu.memory_space<vmem>>, vector<1x32xf32>
    %c0_34 = arith.constant 0 : index
    %c0_35 = arith.constant 0 : index
    %117 = vector.load %arg7[%c0_34, %c0_35] : memref<1x32xf32, #tpu.memory_space<vmem>>, vector<1x32xf32>
    %cst_36 = arith.constant dense<0.000000e+00> : vector<8xf32>
    %118 = vector.multi_reduction <add>, %115, %cst_36 [1] : vector<8x32xf32> to vector<8xf32>
    %119 = vector.shape_cast %118 : vector<8xf32> to vector<8x1xf32>
    %cst_37 = arith.constant 3.200000e+01 : f32
    %120 = vector.broadcast %cst_37 : f32 to vector<8x1xf32>
    %121 = arith.divf %119, %120 : vector<8x1xf32>
    %122 = vector.broadcast %121 : vector<8x1xf32> to vector<8x32xf32>
    %123 = arith.subf %115, %122 : vector<8x32xf32>
    %124 = arith.mulf %123, %123 : vector<8x32xf32>
    %cst_38 = arith.constant dense<0.000000e+00> : vector<8xf32>
    %125 = vector.multi_reduction <add>, %124, %cst_38 [1] : vector<8x32xf32> to vector<8xf32>
    %126 = vector.shape_cast %125 : vector<8xf32> to vector<8x1xf32>
    %cst_39 = arith.constant 3.200000e+01 : f32
    %127 = vector.broadcast %cst_39 : f32 to vector<8x1xf32>
    %128 = arith.divf %126, %127 : vector<8x1xf32>
    %cst_40 = arith.constant 9.99999974E-6 : f32
    %129 = vector.broadcast %cst_40 : f32 to vector<8x1xf32>
    %130 = arith.addf %128, %129 : vector<8x1xf32>
    %131 = math.rsqrt %130 : vector<8x1xf32>
    %132 = vector.broadcast %131 : vector<8x1xf32> to vector<8x32xf32>
    %133 = arith.mulf %123, %132 : vector<8x32xf32>
    %134 = vector.broadcast %116 : vector<1x32xf32> to vector<8x32xf32>
    %135 = arith.mulf %133, %134 : vector<8x32xf32>
    %136 = vector.broadcast %117 : vector<1x32xf32> to vector<8x32xf32>
    %137 = arith.addf %135, %136 : vector<8x32xf32>
    %c0_41 = arith.constant 0 : index
    %c0_42 = arith.constant 0 : index
    %138 = vector.load %arg8[%c0_41, %c0_42] : memref<32x128xf32, #tpu.memory_space<vmem>>, vector<32x128xf32>
    %139 = arith.truncf %137 : vector<8x32xf32> to vector<8x32xbf16>
    %140 = arith.truncf %138 : vector<32x128xf32> to vector<32x128xbf16>
    %cst_43 = arith.constant dense<0.000000e+00> : vector<8x128xf32>
    %141 = tpu.matmul %139, %140, %cst_43 {dimension_numbers = #tpu.dot_dimension_numbers<[1], [0], [0], [1], [0, 0, 1, 1], [], []>} : vector<8x32xbf16>, vector<32x128xbf16>, vector<8x128xf32> -> vector<8x128xf32>
    %c0_44 = arith.constant 0 : index
    %c0_45 = arith.constant 0 : index
    %142 = vector.load %arg9[%c0_44, %c0_45] : memref<1x128xf32, #tpu.memory_space<vmem>>, vector<1x128xf32>
    %143 = vector.broadcast %142 : vector<1x128xf32> to vector<8x128xf32>
    %144 = arith.addf %141, %143 : vector<8x128xf32>
    %cst_46 = arith.constant 0.000000e+00 : f32
    %145 = vector.broadcast %cst_46 : f32 to vector<8x128xf32>
    %146 = arith.maximumf %144, %145 : vector<8x128xf32>
    %c0_47 = arith.constant 0 : index
    %c0_48 = arith.constant 0 : index
    %147 = vector.load %arg10[%c0_47, %c0_48] : memref<128x32xf32, #tpu.memory_space<vmem>>, vector<128x32xf32>
    %148 = arith.truncf %146 : vector<8x128xf32> to vector<8x128xbf16>
    %149 = arith.truncf %147 : vector<128x32xf32> to vector<128x32xbf16>
    %cst_49 = arith.constant dense<0.000000e+00> : vector<8x32xf32>
    %150 = tpu.matmul %148, %149, %cst_49 {dimension_numbers = #tpu.dot_dimension_numbers<[1], [0], [0], [1], [0, 0, 1, 1], [], []>} : vector<8x128xbf16>, vector<128x32xbf16>, vector<8x32xf32> -> vector<8x32xf32>
    %c0_50 = arith.constant 0 : index
    %c0_51 = arith.constant 0 : index
    %151 = vector.load %arg11[%c0_50, %c0_51] : memref<1x32xf32, #tpu.memory_space<vmem>>, vector<1x32xf32>
    %152 = vector.broadcast %151 : vector<1x32xf32> to vector<8x32xf32>
    %153 = arith.addf %150, %152 : vector<8x32xf32>
    %154 = arith.addf %137, %153 : vector<8x32xf32>
    %c0_52 = arith.constant 0 : index
    %c0_53 = arith.constant 0 : index
    %155 = vector.load %arg12[%c0_52, %c0_53] : memref<1x32xf32, #tpu.memory_space<vmem>>, vector<1x32xf32>
    %c0_54 = arith.constant 0 : index
    %c0_55 = arith.constant 0 : index
    %156 = vector.load %arg13[%c0_54, %c0_55] : memref<1x32xf32, #tpu.memory_space<vmem>>, vector<1x32xf32>
    %cst_56 = arith.constant dense<0.000000e+00> : vector<8xf32>
    %157 = vector.multi_reduction <add>, %154, %cst_56 [1] : vector<8x32xf32> to vector<8xf32>
    %158 = vector.shape_cast %157 : vector<8xf32> to vector<8x1xf32>
    %cst_57 = arith.constant 3.200000e+01 : f32
    %159 = vector.broadcast %cst_57 : f32 to vector<8x1xf32>
    %160 = arith.divf %158, %159 : vector<8x1xf32>
    %161 = vector.broadcast %160 : vector<8x1xf32> to vector<8x32xf32>
    %162 = arith.subf %154, %161 : vector<8x32xf32>
    %163 = arith.mulf %162, %162 : vector<8x32xf32>
    %cst_58 = arith.constant dense<0.000000e+00> : vector<8xf32>
    %164 = vector.multi_reduction <add>, %163, %cst_58 [1] : vector<8x32xf32> to vector<8xf32>
    %165 = vector.shape_cast %164 : vector<8xf32> to vector<8x1xf32>
    %cst_59 = arith.constant 3.200000e+01 : f32
    %166 = vector.broadcast %cst_59 : f32 to vector<8x1xf32>
    %167 = arith.divf %165, %166 : vector<8x1xf32>
    %cst_60 = arith.constant 9.99999974E-6 : f32
    %168 = vector.broadcast %cst_60 : f32 to vector<8x1xf32>
    %169 = arith.addf %167, %168 : vector<8x1xf32>
    %170 = math.rsqrt %169 : vector<8x1xf32>
    %171 = vector.broadcast %170 : vector<8x1xf32> to vector<8x32xf32>
    %172 = arith.mulf %162, %171 : vector<8x32xf32>
    %173 = vector.broadcast %155 : vector<1x32xf32> to vector<8x32xf32>
    %174 = arith.mulf %172, %173 : vector<8x32xf32>
    %175 = vector.broadcast %156 : vector<1x32xf32> to vector<8x32xf32>
    %176 = arith.addf %174, %175 : vector<8x32xf32>
    %c0_61 = arith.constant 0 : index
    %c0_62 = arith.constant 0 : index
    %c0_63 = arith.constant 0 : index
    %177 = vector.load %arg14[%c0_61, %c0_62, %c0_63] : memref<1x8x32xf32, #tpu.memory_space<vmem>>, vector<1x8x32xf32>
    %178 = vector.shape_cast %177 : vector<1x8x32xf32> to vector<8x32xf32>
    %179 = vector.shape_cast %176 : vector<8x32xf32> to vector<1x8x32xf32>
    tpu.vector_store %arg14[%c0_61, %c0_62, %c0_63], %179 {strides = array<i32>} : memref<1x8x32xf32, #tpu.memory_space<vmem>>, vector<1x8x32xf32>,
    return
  }
  func.func @transform_0(%arg0: i32) -> (i32, i32, i32) {
    %c0_i32 = arith.constant 0 : i32
    %c0_i32_0 = arith.constant 0 : i32
    %c0_i32_1 = arith.constant 0 : i32
    return %arg0, %c0_i32, %c0_i32_0 : i32, i32, i32
  }
  func.func @transform_1(%arg0: i32) -> (i32, i32) {
    %c0_i32 = arith.constant 0 : i32
    %c0_i32_0 = arith.constant 0 : i32
    %c0_i32_1 = arith.constant 0 : i32
    return %c0_i32, %c0_i32_0 : i32, i32
  }
  func.func @transform_2(%arg0: i32) -> (i32, i32) {
    %c0_i32 = arith.constant 0 : i32
    %c0_i32_0 = arith.constant 0 : i32
    %c0_i32_1 = arith.constant 0 : i32
    return %c0_i32, %c0_i32_0 : i32, i32
  }
  func.func @transform_3(%arg0: i32) -> (i32, i32) {
    %c0_i32 = arith.constant 0 : i32
    %c0_i32_0 = arith.constant 0 : i32
    %c0_i32_1 = arith.constant 0 : i32
    return %c0_i32, %c0_i32_0 : i32, i32
  }
  func.func @transform_4(%arg0: i32) -> (i32, i32) {
    %c0_i32 = arith.constant 0 : i32
    %c0_i32_0 = arith.constant 0 : i32
    %c0_i32_1 = arith.constant 0 : i32
    return %c0_i32, %c0_i32_0 : i32, i32
  }
  func.func @transform_5(%arg0: i32) -> (i32, i32) {
    %c0_i32 = arith.constant 0 : i32
    %c0_i32_0 = arith.constant 0 : i32
    %c0_i32_1 = arith.constant 0 : i32
    return %c0_i32, %c0_i32_0 : i32, i32
  }
  func.func @transform_6(%arg0: i32) -> (i32, i32) {
    %c0_i32 = arith.constant 0 : i32
    %c0_i32_0 = arith.constant 0 : i32
    %c0_i32_1 = arith.constant 0 : i32
    return %c0_i32, %c0_i32_0 : i32, i32
  }
  func.func @transform_7(%arg0: i32) -> (i32, i32) {
    %c0_i32 = arith.constant 0 : i32
    %c0_i32_0 = arith.constant 0 : i32
    %c0_i32_1 = arith.constant 0 : i32
    return %c0_i32, %c0_i32_0 : i32, i32
  }
  func.func @transform_8(%arg0: i32) -> (i32, i32) {
    %c0_i32 = arith.constant 0 : i32
    %c0_i32_0 = arith.constant 0 : i32
    %c0_i32_1 = arith.constant 0 : i32
    return %c0_i32, %c0_i32_0 : i32, i32
  }
  func.func @transform_9(%arg0: i32) -> (i32, i32) {
    %c0_i32 = arith.constant 0 : i32
    %c0_i32_0 = arith.constant 0 : i32
    %c0_i32_1 = arith.constant 0 : i32
    return %c0_i32, %c0_i32_0 : i32, i32
  }
  func.func @transform_10(%arg0: i32) -> (i32, i32) {
    %c0_i32 = arith.constant 0 : i32
    %c0_i32_0 = arith.constant 0 : i32
    %c0_i32_1 = arith.constant 0 : i32
    return %c0_i32, %c0_i32_0 : i32, i32
  }
  func.func @transform_11(%arg0: i32) -> (i32, i32) {
    %c0_i32 = arith.constant 0 : i32
    %c0_i32_0 = arith.constant 0 : i32
    %c0_i32_1 = arith.constant 0 : i32
    return %c0_i32, %c0_i32_0 : i32, i32
  }
  func.func @transform_12(%arg0: i32) -> (i32, i32) {
    %c0_i32 = arith.constant 0 : i32
    %c0_i32_0 = arith.constant 0 : i32
    %c0_i32_1 = arith.constant 0 : i32
    return %c0_i32, %c0_i32_0 : i32, i32
  }
  func.func @transform_13(%arg0: i32) -> (i32, i32, i32) {
    %c0_i32 = arith.constant 0 : i32
    %c0_i32_0 = arith.constant 0 : i32
    %c0_i32_1 = arith.constant 0 : i32
    return %arg0, %c0_i32, %c0_i32_0 : i32, i32, i32
  }
}

module attributes {stable_mosaic.version = 11 : i64} {
  func.func @_linear_kernel(%arg0: i32, %arg1: memref<16x4xf32, #tpu.memory_space<vmem>>, %arg2: memref<4x32xf32, #tpu.memory_space<vmem>>, %arg3: memref<1x32xf32, #tpu.memory_space<vmem>>, %arg4: memref<16x32xf32, #tpu.memory_space<vmem>>) attributes {dimension_semantics = [#tpu.dimension_semantics<parallel>], iteration_bounds = array<i64: 1>, scalar_prefetch = 0 : i64, scratch_operands = 0 : i64, tpu.core_type = #tpu.core_type<tc>, window_params = [{transform_indices = @transform_0, window_bounds = array<i64: 16, 4>}, {pipeline_mode = #tpu.pipeline_mode<synchronous>, transform_indices = @transform_1, window_bounds = array<i64: 4, 32>}, {pipeline_mode = #tpu.pipeline_mode<synchronous>, transform_indices = @transform_2, window_bounds = array<i64: 1, 32>}, {transform_indices = @transform_3, window_bounds = array<i64: 16, 32>}]} {
    %c0 = arith.constant 0 : index
    %c0_0 = arith.constant 0 : index
    %0 = vector.load %arg1[%c0, %c0_0] : memref<16x4xf32, #tpu.memory_space<vmem>>, vector<16x4xf32>
    %c0_1 = arith.constant 0 : index
    %c0_2 = arith.constant 0 : index
    %1 = vector.load %arg2[%c0_1, %c0_2] : memref<4x32xf32, #tpu.memory_space<vmem>>, vector<4x32xf32>
    %2 = arith.truncf %0 : vector<16x4xf32> to vector<16x4xbf16>
    %3 = arith.truncf %1 : vector<4x32xf32> to vector<4x32xbf16>
    %cst = arith.constant dense<0.000000e+00> : vector<16x32xf32>
    %4 = tpu.matmul %2, %3, %cst {dimension_numbers = #tpu.dot_dimension_numbers<[1], [0], [0], [1], [0, 0, 1, 1], [], []>} : vector<16x4xbf16>, vector<4x32xbf16>, vector<16x32xf32> -> vector<16x32xf32>
    %c0_3 = arith.constant 0 : index
    %c0_4 = arith.constant 0 : index
    %5 = vector.load %arg3[%c0_3, %c0_4] : memref<1x32xf32, #tpu.memory_space<vmem>>, vector<1x32xf32>
    %6 = vector.broadcast %5 : vector<1x32xf32> to vector<16x32xf32>
    %7 = arith.addf %4, %6 : vector<16x32xf32>
    %c0_5 = arith.constant 0 : index
    %c0_6 = arith.constant 0 : index
    %8 = vector.load %arg4[%c0_5, %c0_6] : memref<16x32xf32, #tpu.memory_space<vmem>>, vector<16x32xf32>
    tpu.vector_store %arg4[%c0_5, %c0_6], %7 {strides = array<i32>} : memref<16x32xf32, #tpu.memory_space<vmem>>, vector<16x32xf32>,
    return
  }
  func.func @transform_0(%arg0: i32) -> (i32, i32) {
    %c0_i32 = arith.constant 0 : i32
    %c0_i32_0 = arith.constant 0 : i32
    return %arg0, %c0_i32 : i32, i32
  }
  func.func @transform_1(%arg0: i32) -> (i32, i32) {
    %c0_i32 = arith.constant 0 : i32
    %c0_i32_0 = arith.constant 0 : i32
    %c0_i32_1 = arith.constant 0 : i32
    return %c0_i32, %c0_i32_0 : i32, i32
  }
  func.func @transform_2(%arg0: i32) -> (i32, i32) {
    %c0_i32 = arith.constant 0 : i32
    %c0_i32_0 = arith.constant 0 : i32
    %c0_i32_1 = arith.constant 0 : i32
    return %c0_i32, %c0_i32_0 : i32, i32
  }
  func.func @transform_3(%arg0: i32) -> (i32, i32) {
    %c0_i32 = arith.constant 0 : i32
    %c0_i32_0 = arith.constant 0 : i32
    return %arg0, %c0_i32 : i32, i32
  }
}

module attributes {stable_mosaic.version = 11 : i64} {
  func.func @_linear_kernel(%arg0: i32, %arg1: memref<16x32xf32, #tpu.memory_space<vmem>>, %arg2: memref<32x32xf32, #tpu.memory_space<vmem>>, %arg3: memref<1x32xf32, #tpu.memory_space<vmem>>, %arg4: memref<16x32xf32, #tpu.memory_space<vmem>>) attributes {dimension_semantics = [#tpu.dimension_semantics<parallel>], iteration_bounds = array<i64: 1>, scalar_prefetch = 0 : i64, scratch_operands = 0 : i64, tpu.core_type = #tpu.core_type<tc>, window_params = [{transform_indices = @transform_0, window_bounds = array<i64: 16, 32>}, {pipeline_mode = #tpu.pipeline_mode<synchronous>, transform_indices = @transform_1, window_bounds = array<i64: 32, 32>}, {pipeline_mode = #tpu.pipeline_mode<synchronous>, transform_indices = @transform_2, window_bounds = array<i64: 1, 32>}, {transform_indices = @transform_3, window_bounds = array<i64: 16, 32>}]} {
    %c0 = arith.constant 0 : index
    %c0_0 = arith.constant 0 : index
    %0 = vector.load %arg1[%c0, %c0_0] : memref<16x32xf32, #tpu.memory_space<vmem>>, vector<16x32xf32>
    %c0_1 = arith.constant 0 : index
    %c0_2 = arith.constant 0 : index
    %1 = vector.load %arg2[%c0_1, %c0_2] : memref<32x32xf32, #tpu.memory_space<vmem>>, vector<32x32xf32>
    %2 = arith.truncf %0 : vector<16x32xf32> to vector<16x32xbf16>
    %3 = arith.truncf %1 : vector<32x32xf32> to vector<32x32xbf16>
    %cst = arith.constant dense<0.000000e+00> : vector<16x32xf32>
    %4 = tpu.matmul %2, %3, %cst {dimension_numbers = #tpu.dot_dimension_numbers<[1], [0], [0], [1], [0, 0, 1, 1], [], []>} : vector<16x32xbf16>, vector<32x32xbf16>, vector<16x32xf32> -> vector<16x32xf32>
    %c0_3 = arith.constant 0 : index
    %c0_4 = arith.constant 0 : index
    %5 = vector.load %arg3[%c0_3, %c0_4] : memref<1x32xf32, #tpu.memory_space<vmem>>, vector<1x32xf32>
    %6 = vector.broadcast %5 : vector<1x32xf32> to vector<16x32xf32>
    %7 = arith.addf %4, %6 : vector<16x32xf32>
    %c0_5 = arith.constant 0 : index
    %c0_6 = arith.constant 0 : index
    %8 = vector.load %arg4[%c0_5, %c0_6] : memref<16x32xf32, #tpu.memory_space<vmem>>, vector<16x32xf32>
    tpu.vector_store %arg4[%c0_5, %c0_6], %7 {strides = array<i32>} : memref<16x32xf32, #tpu.memory_space<vmem>>, vector<16x32xf32>,
    return
  }
  func.func @transform_0(%arg0: i32) -> (i32, i32) {
    %c0_i32 = arith.constant 0 : i32
    %c0_i32_0 = arith.constant 0 : i32
    return %arg0, %c0_i32 : i32, i32
  }
  func.func @transform_1(%arg0: i32) -> (i32, i32) {
    %c0_i32 = arith.constant 0 : i32
    %c0_i32_0 = arith.constant 0 : i32
    %c0_i32_1 = arith.constant 0 : i32
    return %c0_i32, %c0_i32_0 : i32, i32
  }
  func.func @transform_2(%arg0: i32) -> (i32, i32) {
    %c0_i32 = arith.constant 0 : i32
    %c0_i32_0 = arith.constant 0 : i32
    %c0_i32_1 = arith.constant 0 : i32
    return %c0_i32, %c0_i32_0 : i32, i32
  }
  func.func @transform_3(%arg0: i32) -> (i32, i32) {
    %c0_i32 = arith.constant 0 : i32
    %c0_i32_0 = arith.constant 0 : i32
    return %arg0, %c0_i32 : i32, i32
  }
}

</mosaic_0001>

<bundles_post_ra>
// kernel: attention_model_forward.4
= control target key start
LH: loop header
LB: loop body
LE: loop exit
PB: predicated region body
PF: predicated region fallthrough
CT: control target
= control target key end

     0   :  { %v95_v0 = vmov 0.0   ;;  %vm31_vm0 = vcmask 1041408   ;;  %vm96_vm1 = vmmov 0   ;;  %vm27_vm2 = vcmask 31744   ;;  %s135_s1 = inlined_call_operand.vmem [shape: f32[4,32], index: 1, kind: input, shape index: {}]   ;;  %s136_s0 = inlined_call_operand.vmem [shape: f32[16,4], index: 0, kind: input, shape index: {}]   ;;  %s137_s2 = inlined_call_operand.vmem [shape: f32[1,32], index: 2, kind: input, shape index: {}]   ;;  %s138_s3 = inlined_call_operand.vmem [shape: f32[16,32], index: 3, kind: output, shape index: {}]  }
   0x1   :  { %87 = vmatprep.subr.bf16.mxu0 %v95_v0  ;;  %v17_v1 = vld [vmem:[%s135_s1] sm:$0xf]  ;;  %89 = vmatprep.mubr.msk.bf16.mxu0 %vm96_vm1, %v95_v0  ;;  %v16_v3 = vld [vmem:[%s136_s0 + $0x8] sm:$0xff]  ;;  %vm76_vm3 = vcmask 261120  }
   0x2   :  { %v15_v2 = vld [vmem:[%s136_s0] sm:$0xff]  ;;  %v19_v4 = vpack.c.bf16 %v17_v1, %v17_v1 }
   0x3   :  { %v18_v6 = vpack.c.bf16 %v16_v3, %v15_v2  ;;  %v83_v7 = vld [vmem:[%s137_s2] ss:$0 sm:$0xff] }
   0x4   :  { %v33_v5 = vsel %vm31_vm0, %v19_v4, 0 }
   0x5   :  { %88 = vmatpush3.bf16.msra.mxu0 %v33_v5 }
   0x8   :  { %90 = vmatmul.mubr.msk.bf16.vlgmr.msra.gmra.mrb[0].mxu0 %vm27_vm2, %v18_v6 }
  0xdb   :  { %v69_v8 = vpop.f32.mrb[0].mxu0 }
  0xdc   :  { %v70_v9 = vadd.f32 %v83_v7, %v69_v8  ;;  %v91_v10 = vpop.f32.mrb[1].mxu0 }
  0xdd   :  { %v72_v11 = vpop.f32.mrb[2].mxu0 }
  0xde   :  { %77 = vst.msk [vmem:[%s138_s3] sm:$0xff] %vm76_vm3, %v70_v9  ;;  %v73_v12 = vadd.f32 %v83_v7, %v72_v11  ;;  %v92_v13 = vpop.f32.mrb[3].mxu0 }
  0xe0   :  { %78 = vst.msk [vmem:[%s138_s3 + $0x8] sm:$0xff] %vm76_vm3, %v73_v12 }

// kernel: attention_model_forward.7
= control target key start
LH: loop header
LB: loop body
LE: loop exit
PB: predicated region body
PF: predicated region fallthrough
CT: control target
= control target key end

     0   :  { %v137_v3 = vmov 0.0   ;;  %vm138_vm0 = vmmov 0   ;;  %s195_s0 = inlined_call_operand.vmem [shape: f32[16,32], index: 0, kind: input, shape index: {}]   ;;  %s196_s1 = inlined_call_operand.vmem [shape: f32[32,32], index: 1, kind: input, shape index: {}]   ;;  %s197_s2 = inlined_call_operand.vmem [shape: f32[1,32], index: 2, kind: input, shape index: {}]   ;;  %s198_s3 = inlined_call_operand.hbm [shape: f32[16,32], index: 3, kind: output, shape index: {}]  }
   0x1   :  { %v18_v0 = vld [vmem:[%s196_s1] sm:$0xff]  ;;  %v19_v1 = vld [vmem:[%s196_s1 + $0x8] sm:$0xff]  ;;  %v20_v2 = vld [vmem:[%s196_s1 + $0x10] sm:$0xff]  ;;  %100 = vmatprep.subr.bf16.mxu0 %v137_v3  ;;  %104 = vmatprep.mubr.msk.bf16.mxu0 %vm138_vm0, %v137_v3 }
   0x2   :  { %v23_v4 = vpack.c.bf16 %v19_v1, %v18_v0  ;;  %v21_v5 = vld [vmem:[%s196_s1 + $0x18] sm:$0xff] }
   0x3   :  { %8 = vsyncpa [#allocation3], 0  ;;  %v24_v6 = vpack.c.bf16 %v21_v5, %v20_v2  ;;  %v16_v7 = vld [vmem:[%s195_s0] sm:$0xff]  ;;  %v17_v8 = vld [vmem:[%s195_s0 + $0x8] sm:$0xff]  ;;  %vm32_vm1 = vcmask 261120   ;;  %s139_s25 = smov [#allocation2]  }
   0x4   :  { %101 = vmatpush3.bf16.msra.mxu0 %v23_v4  ;;  %v22_v9 = vpack.c.bf16 %v17_v8, %v16_v7  ;;  %v95_v10 = vld [vmem:[%s197_s2] ss:$0 sm:$0xff]  ;;  %s84_s26 = sshll.u32 %s139_s25, 4  ;;  %s85_s26 = int_to_ptr.vmem [resolvable:$true] %s84_s26 }
   0x5   :  { %102 = vmatprep.subr.bf16.mxu0 %v137_v3  ;;  %s113_s0 = scalar_lea.vmem %s85_s26, 256  ;;  %p118_p1 = scmp.lt.s32.totalorder %s85_s26, %s85_s26 }
   0x6   :  { %p114_p0 = scmp.ne.s32.totalorder %s85_s26, %s113_s0  ;;  %p119_p2 = scmp.lt.s32.totalorder %s113_s0, %s113_s0 }
   0x8   :  { %103 = vmatpush3.bf16.msra.mxu0 %v24_v6  ;;  %p120_p3 = por %p119_p2, %p118_p1 }
   0xa   :  { %p121_p4 = pnand %p120_p3, %p114_p0 }
   0xb   :  { %105 = vmatmul.mubr.msk.bf16.vlgmr.msra.gmra.mrb[0].mxu0 %vm32_vm1, %v22_v9 }
  0xde   :  { %v70_v11 = vpop.f32.mrb[0].mxu0 }
  0xdf   :  { %v71_v12 = vadd.f32 %v95_v10, %v70_v11  ;;  %v106_v13 = vpop.f32.mrb[1].mxu0 }
  0xe0   :  { %v73_v14 = vpop.f32.mrb[2].mxu0 }
  0xe1   :  { %77 = vst.msk [vmem:[#allocation2] sm:$0xff] %vm32_vm1, %v71_v12  ;;  %v74_v15 = vadd.f32 %v95_v10, %v73_v14  ;;  %v107_v16 = vpop.f32.mrb[3].mxu0 }
  0xe3   :  { %78 = vst.msk [vmem:[#allocation2 + $0x8] sm:$0xff] %vm32_vm1, %v74_v15 }
  0xe4   :  { %124 = shalt.err (!%p121_p4)
}
  0xe5   :  { %s125_s28 = scalar_lea.hbm %s198_s3, 256 }
  0xe6   :  { %p126_p5 = scmp.ne.s32.totalorder %s198_s3, %s125_s28  ;;  %p129_p6 = scmp.lt.u32.totalorder %s125_s28, %s198_s3 }
  0xe8   :  { %p131_p7 = pnand %p129_p6, %p126_p5 }
  0xea   :  { %134 = shalt.err (!%p131_p7)
}
  0xeb   :  { %s140_s6 = smov 128   ;;  %s141_s7 = smov 8  }
  0xec   :  { %90 = dma.vmem_to_hbm [thread:$0]  %s85_s26, 256, %s198_s3, [#allocation3], %s140_s6, %s140_s6, %s141_s7  }
  0xed   :  { %135 = dma.done.wait [#allocation3], 256  }
  0xee   :  { %136 = vsyncadd [#allocation3], 4294967040 }
  0xef   :  { %94 = vsyncpa [#allocation3], 1 }

// kernel: attention_model_forward.5
= control target key start
LH: loop header
LB: loop body
LE: loop exit
PB: predicated region body
PF: predicated region fallthrough
CT: control target
= control target key end

     0   :  { %s1702_s25 = smov 0   ;;  %s1951_s0 = inlined_call_operand.vmem [shape: f32[2,8,32], index: 0, kind: input, shape index: {}]   ;;  %s1952_s1 = inlined_call_operand.vmem [shape: f32[32,96], index: 1, kind: input, shape index: {}]   ;;  %s1953_s2 = inlined_call_operand.vmem [shape: f32[1,96], index: 2, kind: input, shape index: {}]   ;;  %s1954_s3 = inlined_call_operand.vmem [shape: f32[32,32], index: 3, kind: input, shape index: {}]   ;;  %s1955_s4 = inlined_call_operand.vmem [shape: f32[1,32], index: 4, kind: input, shape index: {}]   ;;  %s1956_s5 = inlined_call_operand.vmem [shape: f32[1,32], index: 5, kind: input, shape index: {}]   ;;  %s1957_s6 = inlined_call_operand.vmem [shape: f32[1,32], index: 6, kind: input, shape index: {}]   ;;  %s1958_s7 = inlined_call_operand.vmem [shape: f32[32,128], index: 7, kind: input, shape index: {}]   ;;  %s1959_s8 = inlined_call_operand.vmem [shape: f32[1,128], index: 8, kind: input, shape index: {}]   ;;  %s1960_s9 = inlined_call_operand.vmem [shape: f32[128,32], index: 9, kind: input, shape index: {}]   ;;  %s1961_s10 = inlined_call_operand.vmem [shape: f32[1,32], index: 10, kind: input, shape index: {}]   ;;  %s1962_s11 = inlined_call_operand.vmem [shape: f32[1,32], index: 11, kind: input, shape index: {}]   ;;  %s1963_s12 = inlined_call_operand.vmem [shape: f32[1,32], index: 12, kind: input, shape index: {}]   ;;  %s1964_s13 = inlined_call_operand.vmem [shape: f32[2,8,32], index: 13, kind: output, shape index: {}]  }
   0x1 LB: > { %s1392_s26 = sadd.s32 4294967295, %s1617_s25   ;;  %p1396_p0 = scmp.ge.s32.totalorder %s1617_s25, 1  ;;  %s1617_s25 = sphi %s1702_s25, %s23_s25  }
   0x2   : > { %p386_p1 = scmp.lt.s32.totalorder %s1617_s25, 3 }
   0x4   : > { %p387_p2 = pnand %p1396_p0, %p386_p1 }
   0x5   : > { %v438_v0 = vld [vmem:[%s1952_s1] sm:$0xff] (!%p387_p2)  ;;  %v439_v1 = vld [vmem:[%s1952_s1 + $0x8] sm:$0xff] (!%p387_p2)  ;;  %v440_v2 = vld [vmem:[%s1952_s1 + $0x10] sm:$0xff] (!%p387_p2)  ;;  %p428_p3 = scmp.lt.s32.totalorder (!%p387_p2), %s1392_s26, 1  ;;  %v1619_v3 = vmov (!%p387_p2), 0.0   ;;  %vm1620_vm0 = vmmov (!%p387_p2), 0  }
   0x6   : > { %390 = sbr.rel (%p387_p2) target bundleno = 4203 (0x106b), region = 72  ;;  %1462 = vmatprep.subr.bf16.mxu1 (!%p387_p2), %v1619_v3  ;;  %v443_v4 = vpack.c.bf16 (!%p387_p2), %v439_v1, %v438_v0  ;;  %v441_v5 = vld [vmem:[%s1952_s1 + $0x18] sm:$0xff] (!%p387_p2)  ;;  %1466 = vmatprep.mubr.msk.bf16.mxu1 (!%p387_p2), %vm1620_vm0, %v1619_v3  ;;  %vm452_vm1 = vcmask (!%p387_p2), 261120   ;;  %v1399_v9 = vld [vmem:[%s1953_s2] ss:$0 sm:$0xff] (!%p387_p2)  ;;  %s1621_s24 = smov (!%p387_p2), 64  }
   0x7   : > { %1488 = vmatprep.subr.bf16.mxu0 (!%p387_p2), %v1619_v3  ;;  %1490 = vmatprep.mubr.msk.bf16.mxu0 (!%p387_p2), %vm1620_vm0, %v1619_v3  ;;  %v444_v6 = vpack.c.bf16 (!%p387_p2), %v441_v5, %v440_v2  ;;  %s1622_s27 = smov (!%p387_p2), 96   ;;  %vm506_vm2 = vcmask (!%p387_p2), 64512   ;;  %vm570_vm3 = vcmask (!%p387_p2), 1043456   ;;  %s1623_s28 = smov (!%p387_p2), 88   ;;  %v498_v53 = vld [vmem:[%s1954_s3 + $0x8] sm:$0xff] (!%p387_p2)  ;;  %v497_v59 = vld [vmem:[%s1954_s3] sm:$0xff] (!%p387_p2) }
   0x8   : > { %1463 = vmatpush3.bf16.msra.mxu1 (!%p387_p2), %v443_v4  ;;  %s1624_s29 = smov (!%p387_p2), 120   ;;  %s1625_s30 = smov (!%p387_p2), 56   ;;  %v728_v54 = vpack.c.bf16 (!%p387_p2), %v498_v53, %v498_v53  ;;  %v615_v60 = vpack.c.bf16 (!%p387_p2), %v497_v59, %v497_v59  ;;  %v500_v59 = vld [vmem:[%s1954_s3 + $0x18] sm:$0xff] (!%p387_p2) }
   0x9   : > { %1464 = vmatprep.subr.bf16.mxu1 (!%p387_p2), %v1619_v3  ;;  %s1626_s14 = smov (!%p387_p2), 80   ;;  %s1627_s15 = smov (!%p387_p2), 112  }
   0xa   : > { %v733_v55 = vsel (!%p387_p2), %vm570_vm3, %v728_v54, 0  ;;  %v779_v0 = vsel (!%p387_p2), %vm570_vm3, %v615_v60, 0  ;;  %s1629_s22 = smov (!%p387_p2), 72   ;;  %s1630_s23 = smov (!%p387_p2), 104   ;;  %v1091_v60 = vpack.c.bf16 (!%p387_p2), %v500_v59, %v500_v59  ;;  %v1415_v59 = vld [vmem:[%s1957_s6] ss:$0 sm:$0xff] (!%p387_p2) }
   0xc   : > { %1465 = vmatpush3.bf16.msra.mxu1 (!%p387_p2), %v444_v6 }
   0xd   : > { %s1966_s26 = smov (!%p428_p3, %s1392_s26), 1  ;;  %1470 = vmatprep.subr.bf16.mxu1 %v1619_v3 }
   0xe   : > { %s1397_s18 = sshll.u32 %s1966_s26, 3 }
   0xf   : > { %s431_s21 = scalar_lea.vmem %s1951_s0, %s1397_s18 }
  0x10   : > { %v1737_v7 = vld [vmem:[%s431_s21] sm:$0xff]  ;;  %s1628_s21 = smov 48  }
  0x11   : > { %v442_v8 = vpack.c.bf16 %v1737_v7, %v1737_v7 }
  0x13   : > { %1467 = vmatmul.mubr.msk.bf16.vlgmr.msra.gmra.mrb[0].mxu1 %vm452_vm1, %v442_v8 }
  0x14   : > { %1472 = vmatprep.mubr.msk.bf16.mxu1 %vm1620_vm0, %v1619_v3 }
  0xe6   : > { %v490_v10 = vpop.f32.mrb[0].mxu1 }
  0xe7   : > { %v491_v11 = vadd.f32 %v1399_v9, %v490_v10  ;;  %v1468_v12 = vpop.f32.mrb[1].mxu1 }
  0xe8   : > { %v493_v13 = vpop.f32.mrb[2].mxu1 }
  0xe9   : > { %v1748_v14 = vpack.c.bf16 %v491_v11, %v491_v11  ;;  %v1469_v15 = vpop.f32.mrb[3].mxu1  ;;  %v496_v18 = vmul.f32 0.35355338, %v491_v11 }
  0xeb   : > { %565 = vrot.lane.b32.xlu1 %v1748_v14, %s1621_s24  ;;  %504 = vrot.lane.b32.xlu0 %v1748_v14, %s1622_s27  ;;  %v1754_v20 = vpack.c.bf16 %v496_v18, %v496_v18 }
 0x15d   : > { %v505_v16 = vpop.permute.xlu0 %504  ;;  %v566_v19 = vpop.permute.xlu1 %565 }
 0x15e   : > { %v511_v17 = vsel %vm506_vm2, %v505_v16, 0  ;;  %v572_v21 = vsel %vm570_vm3, %v566_v19, 0 }
 0x15f   : > { %1471 = vmatpush3.bf16.xpose.msra.mxu1 %v511_v17 }
 0x160   : > { %1476 = vmatprep.subr.bf16.mxu1 %v1619_v3 }
 0x166   : > { %1473 = vmatmul.mubr.msk.bf16.vlgmr.msra.gmra.mrb[4].mxu1 %vm506_vm2, %v1754_v20 }
 0x167   : > { %1477 = vmatpush3.bf16.msra.mxu1 %v572_v21  ;;  %1478 = vmatprep.mubr.msk.bf16.mxu1 %vm1620_vm0, %v1619_v3 }
 0x168   : > { %1482 = vmatprep.subr.bf16.mxu1 %v1619_v3 }
 0x239   : > { %v547_v22 = vpop.f32.mrb[4].mxu1 }
 0x23a   : > { %v1474_v23 = vpop.f32.mrb[5].mxu1  ;;  %v553_v24 = vsel %vm506_vm2, %v547_v22, -inf }
 0x23b   : > { %554 = vmax.xlane.f32.xlu0 %v553_v24  ;;  %v550_v25 = vpop.f32.mrb[6].mxu1 }
 0x23c   : > { %v1475_v26 = vpop.f32.mrb[7].mxu1 }
 0x2c8   : > { %v555_v27 = vpop.xlane.xlu0 %554 }
 0x2c9   : > { %v556_v28 = vsub.f32 %v547_v22, %v555_v27 }
 0x2cb   : > { %v557_v29 = vmul.f32 1.442695, %v556_v28 }
 0x2cd   : > { %1591 = vpow2.f32 %v557_v29 }
 0x2d7   : > { %v1592_v30 = vpop.eup %1591 }
 0x2d8   : > { %v559_v31 = vsel %vm506_vm2, %v1592_v30, 0.0 }
 0x2d9   : > { %560 = vadd.xlane.f32.xlu1 %v559_v31 }
 0x2ea   : > { %619 = vrot.lane.b32.xlu1 %v1748_v14, %s1623_s28  ;;  %s1631_s28 = smov 40  }
 0x2ee   : > { %617 = vrot.lane.b32.xlu1 %v1754_v20, %s1624_s29 }
 0x366   : > { %v561_v32 = vpop.xlane.xlu1 %560 }
 0x367   : > { %1593 = vrcp.f32 %v561_v32 }
 0x36a   : > { %v620_v35 = vpop.permute.xlu1 %619 }
 0x36b   : > { %v625_v37 = vsel %vm506_vm2, %v620_v35, 0 }
 0x36e   : > { %v618_v38 = vpop.permute.xlu1 %617 }
 0x371   : > { %v1594_v33 = vpop.eup %1593 }
 0x372   : > { %v563_v34 = vmul.f32 %v1594_v33, %v1592_v30 }
 0x374   : > { %v564_v36 = vpack.c.bf16 %v563_v34, %v563_v34 }
 0x376   : > { %1479 = vmatmul.mubr.msk.bf16.vlgmr.msra.gmra.mrb[8].mxu1 %vm506_vm2, %v564_v36 }
 0x377   : > { %1483 = vmatpush3.bf16.xpose.msra.mxu1 %v625_v37  ;;  %1484 = vmatprep.mubr.msk.bf16.mxu1 %vm1620_vm0, %v1619_v3 }
 0x378   : > { %1494 = vmatprep.subr.bf16.mxu1 %v1619_v3 }
 0x37e   : > { %1485 = vmatmul.mubr.msk.bf16.vlgmr.msra.gmra.mrb[12].mxu1 %vm506_vm2, %v618_v38 }
 0x37f   : > { %1496 = vmatprep.mubr.msk.bf16.mxu1 %vm1620_vm0, %v1619_v3  ;;  %1495 = vmatpush3.bf16.msra.mxu1 %v733_v55 }
 0x380   : > { %1506 = vmatprep.subr.bf16.mxu1 %v1619_v3 }
 0x449   : > { %v608_v39 = vpop.f32.mrb[8].mxu1 }
 0x44a   : > { %v1480_v40 = vpop.f32.mrb[9].mxu1  ;;  %v614_v1 = vpack.c.bf16 %v608_v39, %v608_v39 }
 0x44b   : > { %v611_v41 = vpop.f32.mrb[10].mxu1 }
 0x44c   : > { %v1481_v42 = vpop.f32.mrb[11].mxu1  ;;  %v499_v41 = vld [vmem:[%s1954_s3 + $0x10] sm:$0xff] }
 0x44d   : > { %v932_v42 = vpack.c.bf16 %v499_v41, %v499_v41  ;;  %v1240_v41 = vld [vmem:[%s1960_s9 + $0x20] sm:$0xff] }
 0x451   : > { %v661_v43 = vpop.f32.mrb[12].mxu1 }
 0x452   : > { %v1486_v44 = vpop.f32.mrb[13].mxu1  ;;  %v667_v45 = vsel %vm506_vm2, %v661_v43, -inf }
 0x453   : > { %668 = vmax.xlane.f32.xlu1 %v667_v45  ;;  %v664_v46 = vpop.f32.mrb[14].mxu1 }
 0x454   : > { %v1487_v47 = vpop.f32.mrb[15].mxu1 }
 0x4e0   : > { %v669_v48 = vpop.xlane.xlu1 %668 }
 0x4e1   : > { %v670_v49 = vsub.f32 %v661_v43, %v669_v48  ;;  %v937_v43 = vsel %vm570_vm3, %v932_v42, 0  ;;  %v1241_v42 = vld [vmem:[%s1960_s9 + $0x28] sm:$0xff] }
 0x4e3   : > { %v671_v50 = vmul.f32 1.442695, %v670_v49 }
 0x4e5   : > { %1595 = vpow2.f32 %v671_v50 }
 0x4ef   : > { %v1596_v51 = vpop.eup %1595 }
 0x4f0   : > { %v673_v52 = vsel %vm506_vm2, %v1596_v51, 0.0 }
 0x4f1   : > { %674 = vadd.xlane.f32.xlu0 %v673_v52 }
 0x507   : > { %679 = vrot.lane.b32.xlu0 %v1748_v14, %s1625_s30 }
 0x50b   : > { %823 = vrot.lane.b32.xlu0 %v1748_v14, %s1626_s14  ;;  %s435_s14 = scalar_lea.vmem %s1964_s13, %s1397_s18 }
 0x50f   : > { %821 = vrot.lane.b32.xlu0 %v1754_v20, %s1627_s15 }
 0x57e   : > { %v675_v56 = vpop.xlane.xlu0 %674 }
 0x57f   : > { %1597 = vrcp.f32 %v675_v56 }
 0x582   : > { %v680_v57 = vpop.permute.xlu0 %679 }
 0x583   : > { %v685_v58 = vsel %vm570_vm3, %v680_v57, 0 }
 0x584   : > { %1489 = vmatpush3.bf16.msra.mxu0 %v685_v58 }
 0x585   : > { %1500 = vmatprep.subr.bf16.mxu0 %v1619_v3 }
 0x586   : > { %v824_v2 = vpop.permute.xlu0 %823 }
 0x587   : > { %v829_v9 = vsel %vm506_vm2, %v824_v2, 0 }
 0x589   : > { %v1598_v61 = vpop.eup %1597 }
 0x58a   : > { %v677_v62 = vmul.f32 %v1598_v61, %v1596_v51  ;;  %v822_v13 = vpop.permute.xlu0 %821  ;;  %v1096_v61 = vsel %vm570_vm3, %v1091_v60, 0 }
 0x58c   : > { %v678_v63 = vpack.c.bf16 %v677_v62, %v677_v62 }
 0x58e   : > { %1491 = vmatmul.mubr.msk.bf16.vlgmr.msra.gmra.mrb[0].mxu0 %vm506_vm2, %v678_v63 }
 0x58f   : > { %1501 = vmatpush3.bf16.msra.mxu0 %v779_v0  ;;  %1502 = vmatprep.mubr.msk.bf16.mxu0 %vm1620_vm0, %v1619_v3 }
 0x590   : > { %1512 = vmatprep.subr.bf16.mxu0 %v1619_v3 }
 0x596   : > { %1503 = vmatmul.mubr.msk.bf16.vlgmr.msra.gmra.mrb[4].mxu0 %vm506_vm2, %v614_v1 }
 0x597   : > { %1514 = vmatprep.mubr.msk.bf16.mxu0 %vm1620_vm0, %v1619_v3 }
 0x661   : > { %v721_v4 = vpop.f32.mrb[0].mxu0 }
 0x662   : > { %v727_v5 = vpack.c.bf16 %v721_v4, %v721_v4  ;;  %v1492_v6 = vpop.f32.mrb[1].mxu0 }
 0x663   : > { %v724_v8 = vpop.f32.mrb[2].mxu0 }
 0x664   : > { %v1493_v10 = vpop.f32.mrb[3].mxu0  ;;  %1497 = vmatmul.mubr.msk.bf16.vlgmr.msra.gmra.mrb[16].mxu1 %vm506_vm2, %v727_v5 }
 0x665   : > { %1507 = vmatpush3.bf16.xpose.msra.mxu1 %v829_v9  ;;  %1508 = vmatprep.mubr.msk.bf16.mxu1 %vm1620_vm0, %v1619_v3 }
 0x666   : > { %1518 = vmatprep.subr.bf16.mxu1 %v1619_v3 }
 0x669   : > { %v815_v11 = vpop.f32.mrb[4].mxu0 }
 0x66a   : > { %v1504_v12 = vpop.f32.mrb[5].mxu0 }
 0x66b   : > { %v818_v15 = vpop.f32.mrb[6].mxu0 }
 0x66c   : > { %v1505_v16 = vpop.f32.mrb[7].mxu0  ;;  %1509 = vmatmul.mubr.msk.bf16.vlgmr.msra.gmra.mrb[20].mxu1 %vm506_vm2, %v822_v13 }
 0x66d   : > { %1520 = vmatprep.mubr.msk.bf16.mxu1 %vm1620_vm0, %v1619_v3  ;;  %1519 = vmatpush3.bf16.msra.mxu1 %v937_v43  ;;  %v1255_v43 = vpack.c.bf16 %v1241_v42, %v1240_v41 }
 0x66e   : > { %1530 = vmatprep.subr.bf16.mxu1 %v1619_v3 }
 0x737   : > { %v769_v17 = vpop.f32.mrb[16].mxu1 }
 0x738   : > { %v1805_v18 = vadd.f32 %v815_v11, %v769_v17  ;;  %v1498_v19 = vpop.f32.mrb[17].mxu1  ;;  %v1413_v17 = vld [vmem:[%s1955_s4] ss:$0 sm:$0xff] }
 0x739   : > { %v772_v21 = vpop.f32.mrb[18].mxu1 }
 0x73a   : > { %v1499_v22 = vpop.f32.mrb[19].mxu1 }
 0x73f   : > { %v865_v23 = vpop.f32.mrb[20].mxu1 }
 0x740   : > { %v1510_v24 = vpop.f32.mrb[21].mxu1  ;;  %v871_v25 = vsel %vm506_vm2, %v865_v23, -inf }
 0x741   : > { %872 = vmax.xlane.f32.xlu1 %v871_v25  ;;  %v868_v26 = vpop.f32.mrb[22].mxu1 }
 0x742   : > { %v1511_v27 = vpop.f32.mrb[23].mxu1 }
 0x752   : > { %883 = vrot.lane.b32.xlu1 %v1748_v14, %s1628_s21 }
 0x756   : > { %982 = vrot.lane.b32.xlu1 %v1748_v14, %s1629_s22 }
 0x75a   : > { %980 = vrot.lane.b32.xlu1 %v1754_v20, %s1630_s23 }
 0x7ce   : > { %v873_v28 = vpop.xlane.xlu1 %872 }
 0x7cf   : > { %v874_v29 = vsub.f32 %v865_v23, %v873_v28 }
 0x7d1   : > { %v875_v30 = vmul.f32 1.442695, %v874_v29 }
 0x7d2   : > { %v884_v31 = vpop.permute.xlu1 %883 }
 0x7d3   : > { %1599 = vpow2.f32 %v875_v30  ;;  %v889_v32 = vsel %vm570_vm3, %v884_v31, 0  ;;  %v1178_v31 = vld [vmem:[%s1958_s7] sm:$0xff] }
 0x7d4   : > { %1513 = vmatpush3.bf16.msra.mxu0 %v889_v32  ;;  %v1179_v32 = vld [vmem:[%s1958_s7 + $0x8] sm:$0xff] }
 0x7d5   : > { %1524 = vmatprep.subr.bf16.mxu0 %v1619_v3 }
 0x7d6   : > { %v983_v38 = vpop.permute.xlu1 %982 }
 0x7d7   : > { %v988_v39 = vsel %vm506_vm2, %v983_v38, 0  ;;  %v1238_v38 = vld [vmem:[%s1960_s9 + $0x10] sm:$0xff] }
 0x7da   : > { %v981_v40 = vpop.permute.xlu1 %980 }
 0x7dd   : > { %v1600_v33 = vpop.eup %1599 }
 0x7de   : > { %v877_v34 = vsel %vm506_vm2, %v1600_v33, 0.0 }
 0x7df   : > { %878 = vadd.xlane.f32.xlu0 %v877_v34  ;;  %v1181_v34 = vld [vmem:[%s1958_s7 + $0x18] sm:$0xff] }
 0x86c   : > { %v879_v35 = vpop.xlane.xlu0 %878 }
 0x86d   : > { %1601 = vrcp.f32 %v879_v35 }
 0x877   : > { %v1602_v36 = vpop.eup %1601 }
 0x878   : > { %v881_v37 = vmul.f32 %v1602_v36, %v1600_v33  ;;  %v1183_v33 = vpack.c.bf16 %v1179_v32, %v1178_v31  ;;  %v1236_v36 = vld [vmem:[%s1960_s9] sm:$0xff] }
 0x879   : > { %v1419_v32 = vld [vmem:[%s1962_s11] ss:$0 sm:$0xff] }
 0x87a   : > { %v882_v20 = vpack.c.bf16 %v881_v37, %v881_v37  ;;  %v1237_v37 = vld [vmem:[%s1960_s9 + $0x8] sm:$0xff] }
 0x87c   : > { %1515 = vmatmul.mubr.msk.bf16.vlgmr.msra.gmra.mrb[8].mxu0 %vm506_vm2, %v882_v20  ;;  %v1253_v20 = vpack.c.bf16 %v1237_v37, %v1236_v36 }
 0x87d   : > { %1525 = vmatpush3.bf16.xpose.msra.mxu0 %v988_v39  ;;  %1526 = vmatprep.mubr.msk.bf16.mxu0 %vm1620_vm0, %v1619_v3  ;;  %v1239_v39 = vld [vmem:[%s1960_s9 + $0x18] sm:$0xff] }
 0x87e   : > { %1536 = vmatprep.subr.bf16.mxu0 %v1619_v3 }
 0x884   : > { %1527 = vmatmul.mubr.msk.bf16.vlgmr.msra.gmra.mrb[12].mxu0 %vm506_vm2, %v981_v40  ;;  %v1254_v40 = vpack.c.bf16 %v1239_v39, %v1238_v38 }
 0x885   : > { %1538 = vmatprep.mubr.msk.bf16.mxu0 %vm1620_vm0, %v1619_v3  ;;  %1537 = vmatpush3.bf16.msra.mxu0 %v1096_v61 }
 0x886   : > { %1550 = vmatprep.subr.bf16.mxu0 %v1619_v3 }
 0x94f   : > { %v925_v44 = vpop.f32.mrb[8].mxu0 }
 0x950   : > { %v931_v45 = vpack.c.bf16 %v925_v44, %v925_v44  ;;  %v1516_v46 = vpop.f32.mrb[9].mxu0  ;;  %v1242_v44 = vld [vmem:[%s1960_s9 + $0x30] sm:$0xff] }
 0x951   : > { %v928_v47 = vpop.f32.mrb[10].mxu0 }
 0x952   : > { %v1517_v48 = vpop.f32.mrb[11].mxu0  ;;  %1521 = vmatmul.mubr.msk.bf16.vlgmr.msra.gmra.mrb[24].mxu1 %vm506_vm2, %v931_v45  ;;  %v1243_v45 = vld [vmem:[%s1960_s9 + $0x38] sm:$0xff]  ;;  %v1244_v47 = vld [vmem:[%s1960_s9 + $0x40] sm:$0xff] }
 0x953   : > { %1532 = vmatprep.mubr.msk.bf16.mxu1 %vm1620_vm0, %v1619_v3  ;;  %v1256_v46 = vpack.c.bf16 %v1243_v45, %v1242_v44  ;;  %v1245_v48 = vld [vmem:[%s1960_s9 + $0x48] sm:$0xff] }
 0x957   : > { %v1024_v49 = vpop.f32.mrb[12].mxu0 }
 0x958   : > { %v1528_v50 = vpop.f32.mrb[13].mxu0  ;;  %v1030_v51 = vsel %vm506_vm2, %v1024_v49, -inf }
 0x959   : > { %1031 = vmax.xlane.f32.xlu1 %v1030_v51  ;;  %v1027_v52 = vpop.f32.mrb[14].mxu0  ;;  %v1246_v50 = vld [vmem:[%s1960_s9 + $0x50] sm:$0xff]  ;;  %v1247_v51 = vld [vmem:[%s1960_s9 + $0x58] sm:$0xff] }
 0x95a   : > { %v1529_v53 = vpop.f32.mrb[15].mxu0  ;;  %v1258_v52 = vpack.c.bf16 %v1247_v51, %v1246_v50 }
 0x9e6   : > { %v1032_v54 = vpop.xlane.xlu1 %1031 }
 0x9e7   : > { %v1033_v55 = vsub.f32 %v1024_v49, %v1032_v54  ;;  %v1257_v49 = vpack.c.bf16 %v1245_v48, %v1244_v47 }
 0x9e9   : > { %v1034_v56 = vmul.f32 1.442695, %v1033_v55 }
 0x9eb   : > { %1603 = vpow2.f32 %v1034_v56 }
 0x9f5   : > { %v1604_v57 = vpop.eup %1603 }
 0x9f6   : > { %v1036_v58 = vsel %vm506_vm2, %v1604_v57, 0.0 }
 0x9f7   : > { %1037 = vadd.xlane.f32.xlu0 %v1036_v58 }
 0xa0d   : > { %1042 = vrot.lane.b32.xlu0 %v1748_v14, %s1631_s28 }
 0xa25   : > { %v973_v62 = vpop.f32.mrb[24].mxu1 }
 0xa26   : > { %v979_v63 = vadd.f32 %v973_v62, %v1805_v18  ;;  %v1522_v0 = vpop.f32.mrb[25].mxu1 }
 0xa27   : > { %v976_v1 = vpop.f32.mrb[26].mxu1  ;;  %v1249_v0 = vld [vmem:[%s1960_s9 + $0x68] sm:$0xff] }
 0xa28   : > { %v1523_v2 = vpop.f32.mrb[27].mxu1 }
 0xa29   : > { %v1250_v2 = vld [vmem:[%s1960_s9 + $0x70] sm:$0xff] }
 0xa84   : > { %v1038_v4 = vpop.xlane.xlu0 %1037 }
 0xa85   : > { %1605 = vrcp.f32 %v1038_v4  ;;  %v1251_v4 = vld [vmem:[%s1960_s9 + $0x78] sm:$0xff] }
 0xa88   : > { %v1043_v5 = vpop.permute.xlu0 %1042 }
 0xa89   : > { %v1048_v14 = vsel %vm570_vm3, %v1043_v5, 0  ;;  %v1260_v5 = vpack.c.bf16 %v1251_v4, %v1250_v2 }
 0xa8a   : > { %1531 = vmatpush3.bf16.msra.mxu1 %v1048_v14  ;;  %v1416_v14 = vld [vmem:[%s1959_s8] ss:$0 sm:$0xff] }
 0xa8b   : > { %1542 = vmatprep.subr.bf16.mxu1 %v1619_v3 }
 0xa8f   : > { %v1606_v6 = vpop.eup %1605 }
 0xa90   : > { %v1040_v8 = vmul.f32 %v1606_v6, %v1604_v57  ;;  %v1414_v57 = vld [vmem:[%s1956_s5] ss:$0 sm:$0xff] }
 0xa92   : > { %v1041_v9 = vpack.c.bf16 %v1040_v8, %v1040_v8 }
 0xa94   : > { %1533 = vmatmul.mubr.msk.bf16.vlgmr.msra.gmra.mrb[28].mxu1 %vm506_vm2, %v1041_v9 }
 0xa95   : > { %1546 = vmatprep.mubr.msk.bf16.mxu1 %vm1620_vm0, %v1619_v3  ;;  %1543 = vmatpush3.bf16.msra.mxu1 %v1183_v33 }
 0xa96   : > { %1544 = vmatprep.subr.bf16.mxu1 %v1619_v3 }
 0xb67   : > { %v1084_v10 = vpop.f32.mrb[28].mxu1 }
 0xb68   : > { %v1090_v11 = vpack.c.bf16 %v1084_v10, %v1084_v10  ;;  %v1534_v12 = vpop.f32.mrb[29].mxu1 }
 0xb69   : > { %v1087_v13 = vpop.f32.mrb[30].mxu1 }
 0xb6a   : > { %v1535_v15 = vpop.f32.mrb[31].mxu1  ;;  %1539 = vmatmul.mubr.msk.bf16.vlgmr.msra.gmra.mrb[16].mxu0 %vm506_vm2, %v1090_v11  ;;  %v1418_v13 = vld [vmem:[%s1961_s10] ss:$0 sm:$0xff] }
 0xb6b   : > { %1566 = vmatprep.mubr.msk.bf16.mxu0 %vm1620_vm0, %v1619_v3  ;;  %1551 = vmatpush3.bf16.msra.mxu0 %v1253_v20 }
 0xb6c   : > { %1552 = vmatprep.subr.bf16.mxu0 %v1619_v3 }
 0xb6f   : > { %1553 = vmatpush3.bf16.msra.mxu0 %v1254_v40 }
 0xb70   : > { %1554 = vmatprep.subr.bf16.mxu0 %v1619_v3 }
 0xb73   : > { %1555 = vmatpush3.bf16.msra.mxu0 %v1255_v43 }
 0xb74   : > { %1556 = vmatprep.subr.bf16.mxu0 %v1619_v3 }
 0xb77   : > { %1557 = vmatpush3.bf16.msra.mxu0 %v1256_v46 }
 0xb78   : > { %1558 = vmatprep.subr.bf16.mxu0 %v1619_v3 }
 0xb7b   : > { %1559 = vmatpush3.bf16.msra.mxu0 %v1257_v49 }
 0xb7c   : > { %1560 = vmatprep.subr.bf16.mxu0 %v1619_v3 }
 0xb7f   : > { %1561 = vmatpush3.bf16.msra.mxu0 %v1258_v52 }
 0xb80   : > { %1562 = vmatprep.subr.bf16.mxu0 %v1619_v3 }
 0xc3d   : > { %v1132_v16 = vpop.f32.mrb[16].mxu0 }
 0xc3e   : > { %v1138_v18 = vadd.f32 %v1132_v16, %v979_v63  ;;  %v1540_v19 = vpop.f32.mrb[17].mxu0  ;;  %v1248_v63 = vld [vmem:[%s1960_s9 + $0x60] sm:$0xff] }
 0xc3f   : > { %v1135_v21 = vpop.f32.mrb[18].mxu0  ;;  %v1259_v1 = vpack.c.bf16 %v1249_v0, %v1248_v63 }
 0xc40   : > { %v1146_v22 = vadd.f32 %v1413_v17, %v1138_v18  ;;  %v1541_v23 = vpop.f32.mrb[19].mxu0 }
 0xc41   : > { %1563 = vmatpush3.bf16.msra.mxu0 %v1259_v1 }
 0xc42   : > { %v1147_v24 = vadd.f32 %v1146_v22, %v1737_v7  ;;  %v1180_v7 = vld [vmem:[%s1958_s7 + $0x10] sm:$0xff]  ;;  %1564 = vmatprep.subr.bf16.mxu0 %v1619_v3 }
 0xc43   : > { %v1184_v35 = vpack.c.bf16 %v1181_v34, %v1180_v7  ;;  %v1420_v7 = vld [vmem:[%s1963_s12] ss:$0 sm:$0xff] }
 0xc44   : > { %v1150_v25 = vsel %vm452_vm1, %v1147_v24, 0.0 }
 0xc45   : > { %1151 = vadd.xlane.f32.xlu0 %v1150_v25  ;;  %1545 = vmatpush3.bf16.msra.mxu1 %v1184_v35 }
 0xc46   : > { %1565 = vmatpush3.bf16.msra.mxu0 %v1260_v5 }
 0xcd2   : > { %v1152_v26 = vpop.xlane.xlu0 %1151 }
 0xcd3   : > { %v1154_v27 = vmul.f32 0.03125, %v1152_v26 }
 0xcd5   : > { %v1155_v28 = vsub.f32 %v1147_v24, %v1154_v27 }
 0xcd7   : > { %v1156_v29 = vmul.f32 %v1155_v28, %v1155_v28 }
 0xcd9   : > { %v1157_v30 = vsel %vm452_vm1, %v1156_v29, 0.0 }
 0xcda   : > { %1158 = vadd.xlane.f32.xlu1 %v1157_v30 }
 0xd67   : > { %v1159_v53 = vpop.xlane.xlu1 %1158 }
 0xd68   : > { %v1160_v54 = vmul.f32 0.03125, %v1159_v53 }
 0xd6a   : > { %v1161_v55 = vadd.f32 1e-05, %v1160_v54 }
 0xd6c   : > { %1607 = vrsqrt.f32 %v1161_v55 }
 0xd76   : > { %v1608_v56 = vpop.eup %1607 }
 0xd77   : > { %v1163_v58 = vmul.f32 %v1608_v56, %v1155_v28 }
 0xd79   : > { %v1170_v60 = vmul.f32 %v1414_v57, %v1163_v58 }
 0xd7b   : > { %v1177_v61 = vadd.f32 %v1415_v59, %v1170_v60 }
 0xd7d   : > { %v1182_v62 = vpack.c.bf16 %v1177_v61, %v1177_v61 }
 0xd7f   : > { %1547 = vmatmul.mubr.msk.bf16.vlgmr.msra.gmra.mrb[32].mxu1 %vm452_vm1, %v1182_v62 }
 0xe52   : > { %v1229_v6 = vpop.f32.mrb[32].mxu1 }
 0xe53   : > { %v1230_v8 = vadd.f32 %v1416_v14, %v1229_v6  ;;  %v1548_v9 = vpop.f32.mrb[33].mxu1 }
 0xe54   : > { %v1232_v10 = vpop.f32.mrb[34].mxu1 }
 0xe55   : > { %v1235_v11 = vmax.f32 %v1230_v8, 0.0  ;;  %v1549_v3 = vpop.f32.mrb[35].mxu1 }
 0xe57   : > { %v1252_v12 = vpack.c.bf16 %v1235_v11, %v1235_v11 }
 0xe59   : > { %1567 = vmatmul.mubr.bf16.vlgmr.msra.gmra.mrb[20].mxu0 %v1252_v12 }
 0xf2c   : > { %v1302_v15 = vpop.f32.mrb[20].mxu0 }
 0xf2d   : > { %v1303_v16 = vadd.f32 %v1418_v13, %v1302_v15  ;;  %v1568_v17 = vpop.f32.mrb[21].mxu0 }
 0xf2e   : > { %v1305_v18 = vpop.f32.mrb[22].mxu0 }
 0xf2f   : > { %v1569_v19 = vpop.f32.mrb[23].mxu0  ;;  %v1308_v21 = vadd.f32 %v1303_v16, %v1177_v61 }
 0xf31   : > { %v1311_v22 = vsel %vm452_vm1, %v1308_v21, 0.0 }
 0xf32   : > { %1312 = vadd.xlane.f32.xlu1 %v1311_v22 }
 0xfbf   : > { %v1313_v23 = vpop.xlane.xlu1 %1312 }
 0xfc0   : > { %v1314_v24 = vmul.f32 0.03125, %v1313_v23 }
 0xfc2   : > { %v1315_v25 = vsub.f32 %v1308_v21, %v1314_v24 }
 0xfc4   : > { %v1316_v26 = vmul.f32 %v1315_v25, %v1315_v25 }
 0xfc6   : > { %v1317_v27 = vsel %vm452_vm1, %v1316_v26, 0.0 }
 0xfc7   : > { %1318 = vadd.xlane.f32.xlu1 %v1317_v27 }
0x1054   : > { %v1319_v28 = vpop.xlane.xlu1 %1318 }
0x1055   : > { %v1320_v29 = vmul.f32 0.03125, %v1319_v28 }
0x1057   : > { %v1321_v30 = vadd.f32 1e-05, %v1320_v29 }
0x1059   : > { %1609 = vrsqrt.f32 %v1321_v30 }
0x1063   : > { %v1610_v31 = vpop.eup %1609 }
0x1064   : > { %v1323_v33 = vmul.f32 %v1610_v31, %v1315_v25 }
0x1066   : > { %v1330_v34 = vmul.f32 %v1419_v32, %v1323_v33 }
0x1068   : > { %v1337_v35 = vadd.f32 %v1420_v7, %v1330_v34 }
0x106a   : > { %1338 = vst.msk [vmem:[%s435_s14] sm:$0xff] %vm452_vm1, %v1337_v35 }
0x106b PF: > { %s23_s25 = sadd.s32 1, %s1617_s25  }
0x106c   : > { %p20_p4 = scmp.ge.s32.totalorder %s23_s25, 4  }
0x106e   :  { %22 = sbr.rel (!%p20_p4) target bundleno = 1 (0x1), region = 102 }

</bundles_post_ra>
